<compile_context>
chip_gen: v6e
topology: v6e:2x2x1
jax: 0.10.0
libtpu: 0.0.40
codegen_flags: <defaults>
</compile_context>

<pallas_src>
import functools

import numpy as np
import jax
import jax.numpy as jnp
from jax.experimental import pallas as pl
from jax.experimental.pallas import tpu as pltpu

H = W = 28
KH = KW = 5
STRIDE = 3
OH = OW = 8                  # (28 - 5) // 3 + 1
C_OUT = 5
K_IN = H * W                 # 784  (unpadded: full-extent last block dim)
FEAT = OH * OW * C_OUT       # 320
HID = 100
OUT = 10

FEAT_PAD = 384               # 3 * 128
HID_PAD = 128
OUT_PAD = 128


def _round_up(x, m):
    return (x + m - 1) // m * m


def cryptonet_kernel(x_ref, a_ref, b0_ref, w1_ref, b1_ref, w2_ref, b2_ref, o_ref):
    # x_ref : (TILE_N, 784)     a_ref : (784, 384)    b0_ref: (1, 384)
    # w1_ref: (384, 128)        b1_ref: (1, 128)
    # w2_ref: (128, 128)        b2_ref: (1, 128)      o_ref : (TILE_N, 128)
    x = x_ref[...]
    # conv1 as one dense matmul (im2col folded into A); f32 accumulation.
    h0 = jnp.dot(x, a_ref[...], preferred_element_type=jnp.float32) + b0_ref[...]
    h0 = h0 * h0                                     # square activation (f32 VPU)
    h1 = jnp.dot(h0.astype(w1_ref.dtype), w1_ref[...],
                 preferred_element_type=jnp.float32) + b1_ref[...]
    h1 = h1 * h1                                     # square activation (f32 VPU)
    o_ref[...] = (jnp.dot(h1.astype(w2_ref.dtype), w2_ref[...],
                          preferred_element_type=jnp.float32)
                  + b2_ref[...]).astype(o_ref.dtype)


def prepare_params(params, compute_dtype=jnp.bfloat16):
    """Fold conv1 into a dense (784, 384) matrix and pad fc weights (pure jnp)."""
    conv_w, conv_b, w1, b1, w2, b2 = params

    # Static scatter indices for the im2col fold (numpy on shapes only).
    oh, ow, kh, kw, c = np.meshgrid(np.arange(OH), np.arange(OW), np.arange(KH),
                                    np.arange(KW), np.arange(C_OUT), indexing="ij")
    rows = ((oh * STRIDE + kh) * W + (ow * STRIDE + kw)).ravel()
    cols = ((oh * OW + ow) * C_OUT + c).ravel()        # NHWC-flatten feature order
    vals = jnp.asarray(conv_w, jnp.float32)[c.ravel(), 0, kh.ravel(), kw.ravel()]

    A = jnp.zeros((K_IN, FEAT_PAD), jnp.float32).at[rows, cols].set(vals)
    b0 = jnp.zeros((1, FEAT_PAD), jnp.float32).at[0, :FEAT].set(
        jnp.tile(jnp.asarray(conv_b, jnp.float32), OH * OW))
    w1p = jnp.zeros((FEAT_PAD, HID_PAD), jnp.float32).at[:FEAT, :HID].set(
        jnp.asarray(w1, jnp.float32).T)
    b1p = jnp.zeros((1, HID_PAD), jnp.float32).at[0, :HID].set(
        jnp.asarray(b1, jnp.float32))
    w2p = jnp.zeros((HID_PAD, OUT_PAD), jnp.float32).at[:HID, :OUT].set(
        jnp.asarray(w2, jnp.float32).T)
    b2p = jnp.zeros((1, OUT_PAD), jnp.float32).at[0, :OUT].set(
        jnp.asarray(b2, jnp.float32))

    # Matmul operands take compute_dtype (bf16 by default: full-rate MXU and
    # half the x HBM stream); biases stay f32 so the elementwise path is f32.
    return (A.astype(compute_dtype), b0, w1p.astype(compute_dtype), b1p,
            w2p.astype(compute_dtype), b2p)


def _chip_defaults():
    """(default batch tile, vmem_limit_bytes) sized for this chip generation."""
    try:
        vmem = int(pltpu.get_tpu_info().vmem_capacity_bytes)
    except Exception:
        vmem = 64 << 20
    if vmem >= (128 << 20):            # v5e / v6e: amortize per-step overhead
        return 2048, 100 << 20
    return 1024, 48 << 20              # v7x (64 MiB / TC) or unknown: stay safe


@functools.partial(jax.jit, static_argnames=("tile", "n_pad", "vmem_limit"))
def _run(x, A, b0, w1p, b1p, w2p, b2p, *, tile, n_pad, vmem_limit):
    n = x.shape[0]
    x_flat = x.reshape(n, K_IN).astype(A.dtype)
    if n_pad == n:
        x_p = x_flat
    else:
        # Explicit zero row-pad (fused under jit): partial last blocks would
        # read garbage on TPU (no runtime bounds check), so keep real zeros.
        x_p = jnp.zeros((n_pad, K_IN), A.dtype).at[:n].set(x_flat)

    out = pl.pallas_call(
        cryptonet_kernel,
        out_shape=jax.ShapeDtypeStruct((n_pad, OUT_PAD), jnp.float32),
        grid=(n_pad // tile,),
        in_specs=[
            pl.BlockSpec((tile, K_IN), lambda i: (i, 0)),        # x: moves per step
            pl.BlockSpec((K_IN, FEAT_PAD), lambda i: (0, 0)),    # A: VMEM-resident
            pl.BlockSpec((1, FEAT_PAD), lambda i: (0, 0)),
            pl.BlockSpec((FEAT_PAD, HID_PAD), lambda i: (0, 0)),
            pl.BlockSpec((1, HID_PAD), lambda i: (0, 0)),
            pl.BlockSpec((HID_PAD, OUT_PAD), lambda i: (0, 0)),
            pl.BlockSpec((1, OUT_PAD), lambda i: (0, 0)),
        ],
        out_specs=pl.BlockSpec((tile, OUT_PAD), lambda i: (i, 0)),
        compiler_params=pltpu.CompilerParams(
            dimension_semantics=("parallel",),   # batch tiles shard across v7x TCs
            vmem_limit_bytes=vmem_limit,
        ),
    )(x_p, A, b0, w1p, b1p, w2p, b2p)
    return out[:n, :OUT]


def cryptonet_apply(x, prepared, *, tile_n=None):
    """Run the kernel on x (N, 1, 28, 28) with pre-folded/padded params."""
    n = x.shape[0]
    default_tile, vmem_limit = _chip_defaults()
    tile_n = default_tile if tile_n is None else tile_n
    # Batch tile: multiple of 8 sublanes, capped by the batch, and shrunk so
    # batch-padding waste stays below ~tile/4 (avoids up to 2x wasted work).
    tile = min(_round_up(tile_n, 8), _round_up(n, 8))
    while tile > 8 and _round_up(n, tile) - n > max(tile // 4, 8):
        tile = max(_round_up(tile // 2, 8), 8)
    n_pad = _round_up(n, tile)
    return _run(x, *prepared, tile=tile, n_pad=n_pad, vmem_limit=vmem_limit)


def cryptonet_forward(x, params, *, tile_n=None, compute_dtype=jnp.bfloat16):
    return cryptonet_apply(x, prepare_params(params, compute_dtype), tile_n=tile_n)


def reference_forward(x, params):
    """Pure-JAX reference matching the PyTorch module semantics exactly."""
    conv_w, conv_b, w1, b1, w2, b2 = params
    hp = jax.lax.Precision.HIGHEST
    y = jax.lax.conv_general_dilated(
        x, conv_w, window_strides=(STRIDE, STRIDE), padding="VALID",
        dimension_numbers=("NCHW", "OIHW", "NCHW"), precision=hp)
    y = y + conv_b[None, :, None, None]
    # torch.transpose(1,3) then (1,2) == NCHW -> NHWC
    y = jnp.transpose(y, (0, 2, 3, 1)).reshape(x.shape[0], -1)
    y = y * y
    y = jnp.matmul(y, w1.T, precision=hp) + b1
    y = y * y
    y = jnp.matmul(y, w2.T, precision=hp) + b2
    return y


if __name__ == "__main__":
    key = jax.random.PRNGKey(0)
    kx, k1, k2, k3, k4, k5, k6 = jax.random.split(key, 7)

    # fc1 expects 320 = 8*8*5 features, which pins the input to 1x28x28 (MNIST).
    conv_w = jax.random.normal(k1, (C_OUT, 1, KH, KW), dtype=jnp.float32) * 0.1
    conv_b = jax.random.normal(k2, (C_OUT,), dtype=jnp.float32) * 0.1
    w1 = jax.random.normal(k3, (HID, FEAT), dtype=jnp.float32) * 0.05
    b1 = jax.random.normal(k4, (HID,), dtype=jnp.float32) * 0.05
    w2 = jax.random.normal(k5, (OUT, HID), dtype=jnp.float32) * 0.05
    b2 = jax.random.normal(k6, (OUT,), dtype=jnp.float32) * 0.05
    params = (conv_w, conv_b, w1, b1, w2, b2)

    x = jax.random.normal(kx, (2, 1, H, W), dtype=jnp.float32) * 0.5
    x2 = jax.random.normal(kx, (20, 1, H, W), dtype=jnp.float32) * 0.5

    # --- f32 compute path: semantics check against the exact reference -----
    prepared_f32 = prepare_params(params, jnp.float32)
    out = jax.block_until_ready(cryptonet_apply(x, prepared_f32))
    np.testing.assert_allclose(np.asarray(out),
                               np.asarray(reference_forward(x, params)),
                               rtol=5e-3, atol=5e-3)
    # Ragged batch with a multi-step grid (exercises batch tiling + row pad).
    out2 = jax.block_until_ready(cryptonet_apply(x2, prepared_f32, tile_n=8))
    np.testing.assert_allclose(np.asarray(out2),
                               np.asarray(reference_forward(x2, params)),
                               rtol=5e-3, atol=5e-3)

    # --- bf16 (default) compute path: compare against a reference that uses
    #     the same bf16-quantized matmul operands (the fold is exact value
    #     placement, so quantizing x/conv_w/w1/w2 reproduces the kernel inputs).
    prepared_bf16 = prepare_params(params)                 # default: bfloat16
    q = lambda a: jnp.asarray(a, jnp.bfloat16).astype(jnp.float32)
    params_q = (q(conv_w), conv_b, q(w1), b1, q(w2), b2)
    out3 = jax.block_until_ready(cryptonet_apply(x2, prepared_bf16, tile_n=8))
    ref3 = reference_forward(q(x2), params_q)
    np.testing.assert_allclose(np.asarray(out3), np.asarray(ref3),
                               rtol=2e-2, atol=2e-2)

    print("KERNEL_OK")
</pallas_src>

<mosaic_0001>
module attributes {stable_mosaic.version = 11 : i64} {
  func.func @cryptonet_kernel(%arg0: i32, %arg1: memref<8x784xf32, #tpu.memory_space<vmem>>, %arg2: memref<784x384xf32, #tpu.memory_space<vmem>>, %arg3: memref<1x384xf32, #tpu.memory_space<vmem>>, %arg4: memref<384x128xf32, #tpu.memory_space<vmem>>, %arg5: memref<1x128xf32, #tpu.memory_space<vmem>>, %arg6: memref<128x128xf32, #tpu.memory_space<vmem>>, %arg7: memref<1x128xf32, #tpu.memory_space<vmem>>, %arg8: memref<8x128xf32, #tpu.memory_space<vmem>>) attributes {dimension_semantics = [#tpu.dimension_semantics<parallel>], iteration_bounds = array<i64: 1>, scalar_prefetch = 0 : i64, scratch_operands = 0 : i64, tpu.core_type = #tpu.core_type<tc>, window_params = [{transform_indices = @transform_0, window_bounds = array<i64: 8, 784>}, {pipeline_mode = #tpu.pipeline_mode<synchronous>, transform_indices = @transform_1, window_bounds = array<i64: 784, 384>}, {pipeline_mode = #tpu.pipeline_mode<synchronous>, transform_indices = @transform_2, window_bounds = array<i64: 1, 384>}, {pipeline_mode = #tpu.pipeline_mode<synchronous>, transform_indices = @transform_3, window_bounds = array<i64: 384, 128>}, {pipeline_mode = #tpu.pipeline_mode<synchronous>, transform_indices = @transform_4, window_bounds = array<i64: 1, 128>}, {pipeline_mode = #tpu.pipeline_mode<synchronous>, transform_indices = @transform_5, window_bounds = array<i64: 128, 128>}, {pipeline_mode = #tpu.pipeline_mode<synchronous>, transform_indices = @transform_6, window_bounds = array<i64: 1, 128>}, {transform_indices = @transform_7, window_bounds = array<i64: 8, 128>}]} {
    %c0 = arith.constant 0 : index
    %c0_0 = arith.constant 0 : index
    %0 = vector.load %arg1[%c0, %c0_0] : memref<8x784xf32, #tpu.memory_space<vmem>>, vector<8x784xf32>
    %c0_1 = arith.constant 0 : index
    %c0_2 = arith.constant 0 : index
    %1 = vector.load %arg2[%c0_1, %c0_2] : memref<784x384xf32, #tpu.memory_space<vmem>>, vector<784x384xf32>
    %cst = arith.constant dense<0.000000e+00> : vector<8x384xf32>
    %2 = tpu.matmul %0, %1, %cst {dimension_numbers = #tpu.dot_dimension_numbers<[1], [0], [0], [1], [0, 0, 1, 1], [], []>} : vector<8x784xf32>, vector<784x384xf32>, vector<8x384xf32> -> vector<8x384xf32>
    %c0_3 = arith.constant 0 : index
    %c0_4 = arith.constant 0 : index
    %3 = vector.load %arg3[%c0_3, %c0_4] : memref<1x384xf32, #tpu.memory_space<vmem>>, vector<1x384xf32>
    %4 = vector.broadcast %3 : vector<1x384xf32> to vector<8x384xf32>
    %5 = arith.addf %2, %4 : vector<8x384xf32>
    %6 = arith.mulf %5, %5 : vector<8x384xf32>
    %c0_5 = arith.constant 0 : index
    %c0_6 = arith.constant 0 : index
    %7 = vector.load %arg4[%c0_5, %c0_6] : memref<384x128xf32, #tpu.memory_space<vmem>>, vector<384x128xf32>
    %cst_7 = arith.constant dense<0.000000e+00> : vector<8x128xf32>
    %8 = tpu.matmul %6, %7, %cst_7 {dimension_numbers = #tpu.dot_dimension_numbers<[1], [0], [0], [1], [0, 0, 1, 1], [], []>} : vector<8x384xf32>, vector<384x128xf32>, vector<8x128xf32> -> vector<8x128xf32>
    %c0_8 = arith.constant 0 : index
    %c0_9 = arith.constant 0 : index
    %9 = vector.load %arg5[%c0_8, %c0_9] : memref<1x128xf32, #tpu.memory_space<vmem>>, vector<1x128xf32>
    %10 = vector.broadcast %9 : vector<1x128xf32> to vector<8x128xf32>
    %11 = arith.addf %8, %10 : vector<8x128xf32>
    %12 = arith.mulf %11, %11 : vector<8x128xf32>
    %c0_10 = arith.constant 0 : index
    %c0_11 = arith.constant 0 : index
    %13 = vector.load %arg6[%c0_10, %c0_11] : memref<128x128xf32, #tpu.memory_space<vmem>>, vector<128x128xf32>
    %cst_12 = arith.constant dense<0.000000e+00> : vector<8x128xf32>
    %14 = tpu.matmul %12, %13, %cst_12 {dimension_numbers = #tpu.dot_dimension_numbers<[1], [0], [0], [1], [0, 0, 1, 1], [], []>} : vector<8x128xf32>, vector<128x128xf32>, vector<8x128xf32> -> vector<8x128xf32>
    %c0_13 = arith.constant 0 : index
    %c0_14 = arith.constant 0 : index
    %15 = vector.load %arg7[%c0_13, %c0_14] : memref<1x128xf32, #tpu.memory_space<vmem>>, vector<1x128xf32>
    %16 = vector.broadcast %15 : vector<1x128xf32> to vector<8x128xf32>
    %17 = arith.addf %14, %16 : vector<8x128xf32>
    %c0_15 = arith.constant 0 : index
    %c0_16 = arith.constant 0 : index
    %18 = vector.load %arg8[%c0_15, %c0_16] : memref<8x128xf32, #tpu.memory_space<vmem>>, vector<8x128xf32>
    tpu.vector_store %arg8[%c0_15, %c0_16], %17 {strides = array<i32>} : memref<8x128xf32, #tpu.memory_space<vmem>>, vector<8x128xf32>,
    return
  }
  func.func @transform_0(%arg0: i32) -> (i32, i32) {
    %c0_i32 = arith.constant 0 : i32
    %c0_i32_0 = arith.constant 0 : i32
    return %arg0, %c0_i32 : i32, i32
  }
  func.func @transform_1(%arg0: i32) -> (i32, i32) {
    %c0_i32 = arith.constant 0 : i32
    %c0_i32_0 = arith.constant 0 : i32
    %c0_i32_1 = arith.constant 0 : i32
    return %c0_i32, %c0_i32_0 : i32, i32
  }
  func.func @transform_2(%arg0: i32) -> (i32, i32) {
    %c0_i32 = arith.constant 0 : i32
    %c0_i32_0 = arith.constant 0 : i32
    %c0_i32_1 = arith.constant 0 : i32
    return %c0_i32, %c0_i32_0 : i32, i32
  }
  func.func @transform_3(%arg0: i32) -> (i32, i32) {
    %c0_i32 = arith.constant 0 : i32
    %c0_i32_0 = arith.constant 0 : i32
    %c0_i32_1 = arith.constant 0 : i32
    return %c0_i32, %c0_i32_0 : i32, i32
  }
  func.func @transform_4(%arg0: i32) -> (i32, i32) {
    %c0_i32 = arith.constant 0 : i32
    %c0_i32_0 = arith.constant 0 : i32
    %c0_i32_1 = arith.constant 0 : i32
    return %c0_i32, %c0_i32_0 : i32, i32
  }
  func.func @transform_5(%arg0: i32) -> (i32, i32) {
    %c0_i32 = arith.constant 0 : i32
    %c0_i32_0 = arith.constant 0 : i32
    %c0_i32_1 = arith.constant 0 : i32
    return %c0_i32, %c0_i32_0 : i32, i32
  }
  func.func @transform_6(%arg0: i32) -> (i32, i32) {
    %c0_i32 = arith.constant 0 : i32
    %c0_i32_0 = arith.constant 0 : i32
    %c0_i32_1 = arith.constant 0 : i32
    return %c0_i32, %c0_i32_0 : i32, i32
  }
  func.func @transform_7(%arg0: i32) -> (i32, i32) {
    %c0_i32 = arith.constant 0 : i32
    %c0_i32_0 = arith.constant 0 : i32
    return %arg0, %c0_i32 : i32, i32
  }
}

</mosaic_0001>

<bundles_post_ra>
// kernel: _run.1
= control target key start
LH: loop header
LB: loop body
LE: loop exit
PB: predicated region body
PF: predicated region fallthrough
CT: control target
= control target key end

     0   :  { %12 = vsyncpa [#allocation3], 0  ;;  %s1844_s0 = inlined_call_operand.vmem [shape: f32[8,784], index: 0, kind: input, shape index: {}]   ;;  %s1845_s1 = inlined_call_operand.hbm [shape: f32[784,384], index: 1, kind: input, shape index: {}]   ;;  %s1846_s2 = inlined_call_operand.hbm [shape: f32[1,384], index: 2, kind: input, shape index: {}]   ;;  %s1847_s3 = inlined_call_operand.hbm [shape: f32[384,128], index: 3, kind: input, shape index: {}]   ;;  %s1848_s4 = inlined_call_operand.hbm [shape: f32[1,128], index: 4, kind: input, shape index: {}]   ;;  %s1849_s5 = inlined_call_operand.hbm [shape: f32[128,128], index: 5, kind: input, shape index: {}]   ;;  %s1850_s6 = inlined_call_operand.hbm [shape: f32[1,128], index: 6, kind: input, shape index: {}]   ;;  %s1851_s7 = inlined_call_operand.vmem [shape: f32[8,128], index: 7, kind: output, shape index: {}]  }
   0x1   :  { %13 = vsyncpa [#allocation5], 0 }
   0x2   :  { %14 = vsyncpa [#allocation8], 0 }
   0x3   :  { %15 = vsyncpa [#allocation11], 0  ;;  %s1687_s24 = smov [#allocation4]   ;;  %s1688_s26 = smov [#allocation7]  }
   0x4   :  { %s36_s25 = sshll.u32 %s1687_s24, 4  ;;  %s58_s27 = sshll.u32 %s1688_s26, 4  ;;  %s37_s25 = int_to_ptr.vmem [resolvable:$true] %s36_s25  ;;  %s59_s27 = int_to_ptr.vmem [resolvable:$true] %s58_s27 }
   0x5   :  { %s1567_s28 = scalar_lea.vmem %s37_s25, 48  ;;  %s1571_s29 = scalar_lea.vmem %s37_s25, 64 }
   0x6   :  { %p1568_p0 = scmp.ne.s32.totalorder %s37_s25, %s1567_s28  ;;  %p1572_p1 = scmp.lt.s32.totalorder %s37_s25, %s37_s25 }
   0x7   :  { %p1573_p2 = scmp.lt.s32.totalorder %s1571_s29, %s1567_s28 }
   0x9   :  { %p1574_p3 = por %p1573_p2, %p1572_p1 }
   0xb   :  { %p1575_p4 = pnand %p1574_p3, %p1568_p0 }
   0xd   :  { %1578 = shalt.err (!%p1575_p4)
}
   0xe   :  { %39 = dma.hbm_to_vmem [thread:$0]  %s1846_s2, 48, %s37_s25, [#allocation5]  }
   0xf   :  { %s1587_s9 = scalar_lea.vmem %s59_s27, 16  ;;  %s1591_s10 = scalar_lea.vmem %s59_s27, 32 }
  0x10   :  { %p1588_p5 = scmp.ne.s32.totalorder %s59_s27, %s1587_s9  ;;  %p1592_p6 = scmp.lt.s32.totalorder %s59_s27, %s59_s27 }
  0x11   :  { %p1593_p7 = scmp.lt.s32.totalorder %s1591_s10, %s1587_s9 }
  0x13   :  { %p1594_p8 = por %p1593_p7, %p1592_p6 }
  0x15   :  { %p1595_p9 = pnand %p1594_p8, %p1588_p5 }
  0x17   :  { %1598 = shalt.err (!%p1595_p9)
}
  0x18   :  { %61 = dma.hbm_to_vmem [thread:$0]  %s1848_s4, 16, %s59_s27, [#allocation8]  }
  0x19   :  { %s1689_s13 = smov [#allocation2]  }
  0x1a   :  { %s23_s14 = sshll.u32 %s1689_s13, 4  ;;  %s24_s14 = int_to_ptr.vmem [resolvable:$true] %s23_s14 }
  0x1b   :  { %s1607_s15 = scalar_lea.vmem %s24_s14, 37632  ;;  %p1612_p11 = scmp.lt.s32.totalorder %s24_s14, %s24_s14 }
  0x1c   :  { %p1608_p10 = scmp.ne.s32.totalorder %s24_s14, %s1607_s15  ;;  %p1613_p12 = scmp.lt.s32.totalorder %s1607_s15, %s1607_s15 }
  0x1e   :  { %p1614_p13 = por %p1613_p12, %p1612_p11 }
  0x20   :  { %p1615_p0 = pnand %p1614_p13, %p1608_p10 }
  0x22   :  { %1618 = shalt.err (!%p1615_p0)
}
  0x23   :  { %s1690_s2 = smov 384   ;;  %s1691_s16 = smov 24  }
  0x24   :  { %29 = dma.hbm_to_vmem [thread:$0]  %s1845_s1, 37632, %s24_s14, [#allocation3], %s1690_s2, %s1690_s2, %s1691_s16  }
  0x25   :  { %s1692_s19 = smov [#allocation6]  }
  0x26   :  { %s45_s20 = sshll.u32 %s1692_s19, 4  ;;  %s46_s20 = int_to_ptr.vmem [resolvable:$true] %s45_s20 }
  0x27   :  { %s1627_s4 = scalar_lea.vmem %s46_s20, 6144  ;;  %p1632_p2 = scmp.lt.s32.totalorder %s46_s20, %s46_s20 }
  0x28   :  { %p1628_p1 = scmp.ne.s32.totalorder %s46_s20, %s1627_s4  ;;  %p1633_p3 = scmp.lt.s32.totalorder %s1627_s4, %s1627_s4 }
  0x2a   :  { %p1634_p4 = por %p1633_p3, %p1632_p2 }
  0x2c   :  { %p1635_p5 = pnand %p1634_p4, %p1628_p1 }
  0x2e   :  { %1638 = shalt.err (!%p1635_p5)
}
  0x2f   :  { %s1693_s21 = smov 128   ;;  %s1694_s22 = smov 8  }
  0x30   :  { %51 = dma.hbm_to_vmem [thread:$0]  %s1847_s3, 6144, %s46_s20, [#allocation5], %s1693_s21, %s1693_s21, %s1694_s22  }
  0x31   :  { %s1695_s25 = smov [#allocation9]   ;;  %s1696_s27 = smov [#allocation10]  }
  0x32   :  { %s67_s26 = sshll.u32 %s1695_s25, 4  ;;  %s80_s1 = sshll.u32 %s1696_s27, 4  ;;  %s68_s26 = int_to_ptr.vmem [resolvable:$true] %s67_s26  ;;  %s81_s1 = int_to_ptr.vmem [resolvable:$true] %s80_s1 }
  0x33   :  { %s1647_s28 = scalar_lea.vmem %s68_s26, 2048  ;;  %p1652_p7 = scmp.lt.s32.totalorder %s68_s26, %s68_s26 }
  0x34   :  { %p1648_p6 = scmp.ne.s32.totalorder %s68_s26, %s1647_s28  ;;  %p1653_p8 = scmp.lt.s32.totalorder %s1647_s28, %s1647_s28 }
  0x36   :  { %p1654_p9 = por %p1653_p8, %p1652_p7 }
  0x38   :  { %p1655_p10 = pnand %p1654_p9, %p1648_p6 }
  0x3a   :  { %1658 = shalt.err (!%p1655_p10)
}
  0x3b   :  { %73 = dma.hbm_to_vmem [thread:$0]  %s1849_s5, 2048, %s68_s26, [#allocation8], %s1693_s21, %s1693_s21, %s1694_s22  }
  0x3c   :  { %s1667_s8 = scalar_lea.vmem %s81_s1, 16  ;;  %s1671_s3 = scalar_lea.vmem %s81_s1, 32 }
  0x3d   :  { %p1668_p11 = scmp.ne.s32.totalorder %s81_s1, %s1667_s8  ;;  %p1672_p12 = scmp.lt.s32.totalorder %s81_s1, %s81_s1 }
  0x3e   :  { %p1673_p13 = scmp.lt.s32.totalorder %s1671_s3, %s1667_s8 }
  0x40   :  { %p1674_p0 = por %p1673_p13, %p1672_p12 }
  0x42   :  { %p1675_p1 = pnand %p1674_p0, %p1668_p11 }
  0x44   :  { %1678 = shalt.err (!%p1675_p1)
}
  0x45   :  { %83 = dma.hbm_to_vmem [thread:$0]  %s1850_s6, 16, %s81_s1, [#allocation11]  }
  0x46   :  { %1679 = dma.done.wait [#allocation3], 37632  }
  0x47   :  { %1680 = vsyncadd [#allocation3], 4294929664 }
  0x48   :  { %1681 = dma.done.wait [#allocation5], 6192  }
  0x49   :  { %1682 = vsyncadd [#allocation5], 4294961104 }
  0x4a   :  { %1683 = dma.done.wait [#allocation8], 2064  }
  0x4b   :  { %1684 = vsyncadd [#allocation8], 4294965232 }
  0x4c   :  { %1685 = dma.done.wait [#allocation11], 16  }
  0x4d   :  { %1686 = vsyncadd [#allocation11], 4294967280  ;;  %v155_v0 = vld [vmem:[#allocation2 + $0x170] sm:$0xff]  ;;  %v154_v1 = vld [vmem:[#allocation2 + $0x168] sm:$0xff]  ;;  %vm420_vm0 = vcmask 130048   ;;  %vm1698_vm1 = vmmov 0  }
  0x4e   :  { %v152_v2 = vld [vmem:[#allocation2 + $0x158] sm:$0xff]  ;;  %424 = vmatprep.subr.mxu0 %v155_v0  ;;  %v251_v3 = vld [vmem:[#allocation2 + $0x470] sm:$0xff]  ;;  %v250_v5 = vld [vmem:[#allocation2 + $0x468] sm:$0xff] }
  0x4f   :  { %v151_v4 = vld [vmem:[#allocation2 + $0x150] sm:$0xff]  ;;  %425 = vmatpush1.msra.mxu0 %v154_v1  ;;  %495 = vmatprep.subr.mxu1 %v251_v3  ;;  %v149_v6 = vld [vmem:[#allocation2 + $0x140] sm:$0xff]  ;;  %v248_v7 = vld [vmem:[#allocation2 + $0x458] sm:$0xff] }
  0x50   :  { %426 = vmatprep.subr.mxu0 %v152_v2  ;;  %496 = vmatpush1.msra.mxu1 %v250_v5  ;;  %v148_v8 = vld [vmem:[#allocation2 + $0x138] sm:$0xff]  ;;  %v247_v9 = vld [vmem:[#allocation2 + $0x450] sm:$0xff]  ;;  %v245_v10 = vld [vmem:[#allocation2 + $0x440] sm:$0xff] }
  0x51   :  { %427 = vmatpush1.msra.mxu0 %v151_v4  ;;  %497 = vmatprep.subr.mxu1 %v248_v7  ;;  %v146_v11 = vld [vmem:[#allocation2 + $0x128] sm:$0xff]  ;;  %v244_v12 = vld [vmem:[#allocation2 + $0x438] sm:$0xff]  ;;  %v145_v13 = vld [vmem:[#allocation2 + $0x120] sm:$0xff] }
  0x52   :  { %428 = vmatprep.subr.mxu0 %v149_v6  ;;  %498 = vmatpush1.msra.mxu1 %v247_v9  ;;  %v242_v14 = vld [vmem:[#allocation2 + $0x428] sm:$0xff]  ;;  %v143_v15 = vld [vmem:[#allocation2 + $0x110] sm:$0xff]  ;;  %v241_v16 = vld [vmem:[#allocation2 + $0x420] sm:$0xff] }
  0x53   :  { %429 = vmatpush1.msra.mxu0 %v148_v8  ;;  %499 = vmatprep.subr.mxu1 %v245_v10  ;;  %v142_v17 = vld [vmem:[#allocation2 + $0x108] sm:$0xff]  ;;  %v239_v18 = vld [vmem:[#allocation2 + $0x410] sm:$0xff]  ;;  %v140_v19 = vld [vmem:[#allocation2 + $0xf8] sm:$0xff] }
  0x54   :  { %430 = vmatprep.subr.mxu0 %v146_v11  ;;  %500 = vmatpush1.msra.mxu1 %v244_v12  ;;  %v238_v20 = vld [vmem:[#allocation2 + $0x408] sm:$0xff]  ;;  %v139_v21 = vld [vmem:[#allocation2 + $0xf0] sm:$0xff]  ;;  %v236_v22 = vld [vmem:[#allocation2 + $0x3f8] sm:$0xff] }
  0x55   :  { %431 = vmatpush1.msra.mxu0 %v145_v13  ;;  %501 = vmatprep.subr.mxu1 %v242_v14  ;;  %v137_v23 = vld [vmem:[#allocation2 + $0xe0] sm:$0xff]  ;;  %v235_v24 = vld [vmem:[#allocation2 + $0x3f0] sm:$0xff]  ;;  %v136_v25 = vld [vmem:[#allocation2 + $0xd8] sm:$0xff] }
  0x56   :  { %432 = vmatprep.subr.mxu0 %v143_v15  ;;  %502 = vmatpush1.msra.mxu1 %v241_v16  ;;  %v233_v26 = vld [vmem:[#allocation2 + $0x3e0] sm:$0xff]  ;;  %v134_v27 = vld [vmem:[#allocation2 + $0xc8] sm:$0xff]  ;;  %v232_v28 = vld [vmem:[#allocation2 + $0x3d8] sm:$0xff] }
  0x57   :  { %433 = vmatpush1.msra.mxu0 %v142_v17  ;;  %503 = vmatprep.subr.mxu1 %v239_v18  ;;  %v133_v29 = vld [vmem:[#allocation2 + $0xc0] sm:$0xff]  ;;  %v230_v30 = vld [vmem:[#allocation2 + $0x3c8] sm:$0xff]  ;;  %v131_v31 = vld [vmem:[#allocation2 + $0xb0] sm:$0xff] }
  0x58   :  { %434 = vmatprep.subr.mxu0 %v140_v19  ;;  %504 = vmatpush1.msra.mxu1 %v238_v20  ;;  %v229_v32 = vld [vmem:[#allocation2 + $0x3c0] sm:$0xff]  ;;  %v130_v33 = vld [vmem:[#allocation2 + $0xa8] sm:$0xff]  ;;  %v227_v34 = vld [vmem:[#allocation2 + $0x3b0] sm:$0xff] }
  0x59   :  { %435 = vmatpush1.msra.mxu0 %v139_v21  ;;  %505 = vmatprep.subr.mxu1 %v236_v22  ;;  %v128_v35 = vld [vmem:[#allocation2 + $0x98] sm:$0xff]  ;;  %v226_v36 = vld [vmem:[#allocation2 + $0x3a8] sm:$0xff]  ;;  %v127_v37 = vld [vmem:[#allocation2 + $0x90] sm:$0xff] }
  0x5a   :  { %436 = vmatprep.subr.mxu0 %v137_v23  ;;  %506 = vmatpush1.msra.mxu1 %v235_v24  ;;  %v224_v38 = vld [vmem:[#allocation2 + $0x398] sm:$0xff]  ;;  %v125_v39 = vld [vmem:[#allocation2 + $0x80] sm:$0xff]  ;;  %v223_v40 = vld [vmem:[#allocation2 + $0x390] sm:$0xff] }
  0x5b   :  { %437 = vmatpush1.msra.mxu0 %v136_v25  ;;  %507 = vmatprep.subr.mxu1 %v233_v26  ;;  %v124_v41 = vld [vmem:[#allocation2 + $0x78] sm:$0xff]  ;;  %v221_v42 = vld [vmem:[#allocation2 + $0x380] sm:$0xff]  ;;  %v122_v43 = vld [vmem:[#allocation2 + $0x68] sm:$0xff] }
  0x5c   :  { %438 = vmatprep.subr.mxu0 %v134_v27  ;;  %508 = vmatpush1.msra.mxu1 %v232_v28  ;;  %v220_v44 = vld [vmem:[#allocation2 + $0x378] sm:$0xff]  ;;  %v121_v45 = vld [vmem:[#allocation2 + $0x60] sm:$0xff]  ;;  %v218_v46 = vld [vmem:[#allocation2 + $0x368] sm:$0xff] }
  0x5d   :  { %439 = vmatpush1.msra.mxu0 %v133_v29  ;;  %509 = vmatprep.subr.mxu1 %v230_v30  ;;  %v119_v47 = vld [vmem:[#allocation2 + $0x50] sm:$0xff]  ;;  %v217_v48 = vld [vmem:[#allocation2 + $0x360] sm:$0xff]  ;;  %v118_v49 = vld [vmem:[#allocation2 + $0x48] sm:$0xff] }
  0x5e   :  { %440 = vmatprep.subr.mxu0 %v131_v31  ;;  %510 = vmatpush1.msra.mxu1 %v229_v32  ;;  %v215_v50 = vld [vmem:[#allocation2 + $0x350] sm:$0xff]  ;;  %v116_v51 = vld [vmem:[#allocation2 + $0x38] sm:$0xff]  ;;  %v214_v52 = vld [vmem:[#allocation2 + $0x348] sm:$0xff] }
  0x5f   :  { %441 = vmatpush1.msra.mxu0 %v130_v33  ;;  %511 = vmatprep.subr.mxu1 %v227_v34  ;;  %v115_v53 = vld [vmem:[#allocation2 + $0x30] sm:$0xff]  ;;  %v212_v54 = vld [vmem:[#allocation2 + $0x338] sm:$0xff]  ;;  %v113_v55 = vld [vmem:[#allocation2 + $0x20] sm:$0xff] }
  0x60   :  { %442 = vmatprep.subr.mxu0 %v128_v35  ;;  %512 = vmatpush1.msra.mxu1 %v226_v36  ;;  %v211_v56 = vld [vmem:[#allocation2 + $0x330] sm:$0xff]  ;;  %v112_v57 = vld [vmem:[#allocation2 + $0x18] sm:$0xff]  ;;  %v209_v58 = vld [vmem:[#allocation2 + $0x320] sm:$0xff] }
  0x61   :  { %443 = vmatpush1.msra.mxu0 %v127_v37  ;;  %513 = vmatprep.subr.mxu1 %v224_v38  ;;  %v110_v59 = vld [vmem:[#allocation2 + $0x8] sm:$0xff]  ;;  %v208_v60 = vld [vmem:[#allocation2 + $0x318] sm:$0xff]  ;;  %v109_v61 = vld [vmem:[#allocation2] sm:$0xff] }
  0x62   :  { %444 = vmatprep.subr.mxu0 %v125_v39  ;;  %514 = vmatpush1.msra.mxu1 %v223_v40  ;;  %v206_v62 = vld [vmem:[#allocation2 + $0x308] sm:$0xff]  ;;  %v203_v63 = vld [vmem:[#allocation2 + $0x2f0] sm:$0xff]  ;;  %v205_v0 = vld [vmem:[#allocation2 + $0x300] sm:$0xff] }
  0x63   :  { %445 = vmatpush1.msra.mxu0 %v124_v41  ;;  %515 = vmatprep.subr.mxu1 %v221_v42  ;;  %v202_v1 = vld [vmem:[#allocation2 + $0x2e8] sm:$0xff]  ;;  %v299_v2 = vld [vmem:[#allocation2 + $0x5f0] sm:$0xff]  ;;  %v200_v3 = vld [vmem:[#allocation2 + $0x2d8] sm:$0xff] }
  0x64   :  { %446 = vmatprep.subr.mxu0 %v122_v43  ;;  %516 = vmatpush1.msra.mxu1 %v220_v44  ;;  %v298_v4 = vld [vmem:[#allocation2 + $0x5e8] sm:$0xff]  ;;  %v199_v5 = vld [vmem:[#allocation2 + $0x2d0] sm:$0xff]  ;;  %v296_v6 = vld [vmem:[#allocation2 + $0x5d8] sm:$0xff] }
  0x65   :  { %447 = vmatpush1.msra.mxu0 %v121_v45  ;;  %517 = vmatprep.subr.mxu1 %v218_v46  ;;  %v197_v7 = vld [vmem:[#allocation2 + $0x2c0] sm:$0xff]  ;;  %v295_v8 = vld [vmem:[#allocation2 + $0x5d0] sm:$0xff]  ;;  %v196_v9 = vld [vmem:[#allocation2 + $0x2b8] sm:$0xff] }
  0x66   :  { %448 = vmatprep.subr.mxu0 %v119_v47  ;;  %518 = vmatpush1.msra.mxu1 %v217_v48  ;;  %v293_v10 = vld [vmem:[#allocation2 + $0x5c0] sm:$0xff]  ;;  %v194_v11 = vld [vmem:[#allocation2 + $0x2a8] sm:$0xff]  ;;  %v292_v12 = vld [vmem:[#allocation2 + $0x5b8] sm:$0xff] }
  0x67   :  { %449 = vmatpush1.msra.mxu0 %v118_v49  ;;  %519 = vmatprep.subr.mxu1 %v215_v50  ;;  %v193_v13 = vld [vmem:[#allocation2 + $0x2a0] sm:$0xff]  ;;  %v290_v14 = vld [vmem:[#allocation2 + $0x5a8] sm:$0xff]  ;;  %v191_v15 = vld [vmem:[#allocation2 + $0x290] sm:$0xff] }
  0x68   :  { %450 = vmatprep.subr.mxu0 %v116_v51  ;;  %520 = vmatpush1.msra.mxu1 %v214_v52  ;;  %v289_v16 = vld [vmem:[#allocation2 + $0x5a0] sm:$0xff]  ;;  %v190_v17 = vld [vmem:[#allocation2 + $0x288] sm:$0xff]  ;;  %v287_v18 = vld [vmem:[#allocation2 + $0x590] sm:$0xff] }
  0x69   :  { %451 = vmatpush1.msra.mxu0 %v115_v53  ;;  %521 = vmatprep.subr.mxu1 %v212_v54  ;;  %v188_v19 = vld [vmem:[#allocation2 + $0x278] sm:$0xff]  ;;  %v286_v20 = vld [vmem:[#allocation2 + $0x588] sm:$0xff]  ;;  %v187_v21 = vld [vmem:[#allocation2 + $0x270] sm:$0xff] }
  0x6a   :  { %452 = vmatprep.subr.mxu0 %v113_v55  ;;  %522 = vmatpush1.msra.mxu1 %v211_v56  ;;  %v284_v22 = vld [vmem:[#allocation2 + $0x578] sm:$0xff]  ;;  %v185_v23 = vld [vmem:[#allocation2 + $0x260] sm:$0xff]  ;;  %v283_v24 = vld [vmem:[#allocation2 + $0x570] sm:$0xff] }
  0x6b   :  { %453 = vmatpush1.msra.mxu0 %v112_v57  ;;  %523 = vmatprep.subr.mxu1 %v209_v58  ;;  %v184_v25 = vld [vmem:[#allocation2 + $0x258] sm:$0xff]  ;;  %v281_v26 = vld [vmem:[#allocation2 + $0x560] sm:$0xff]  ;;  %v182_v27 = vld [vmem:[#allocation2 + $0x248] sm:$0xff] }
  0x6c   :  { %454 = vmatprep.subr.mxu0 %v110_v59  ;;  %524 = vmatpush1.msra.mxu1 %v208_v60  ;;  %v280_v28 = vld [vmem:[#allocation2 + $0x558] sm:$0xff]  ;;  %v181_v29 = vld [vmem:[#allocation2 + $0x240] sm:$0xff]  ;;  %v278_v30 = vld [vmem:[#allocation2 + $0x548] sm:$0xff] }
  0x6d   :  { %455 = vmatpush1.msra.mxu0 %v109_v61  ;;  %525 = vmatprep.subr.mxu1 %v206_v62  ;;  %v179_v31 = vld [vmem:[#allocation2 + $0x230] sm:$0xff]  ;;  %v277_v32 = vld [vmem:[#allocation2 + $0x540] sm:$0xff]  ;;  %v178_v33 = vld [vmem:[#allocation2 + $0x228] sm:$0xff] }
  0x6e   :  { %456 = vmatprep.subr.mxu0 %v203_v63  ;;  %526 = vmatpush1.msra.mxu1 %v205_v0  ;;  %v275_v34 = vld [vmem:[#allocation2 + $0x530] sm:$0xff]  ;;  %v176_v35 = vld [vmem:[#allocation2 + $0x218] sm:$0xff]  ;;  %v274_v36 = vld [vmem:[#allocation2 + $0x528] sm:$0xff] }
  0x6f   :  { %457 = vmatpush2.msra.mxu0 %v202_v1  ;;  %527 = vmatprep.subr.mxu1 %v299_v2  ;;  %v175_v37 = vld [vmem:[#allocation2 + $0x210] sm:$0xff]  ;;  %v272_v38 = vld [vmem:[#allocation2 + $0x518] sm:$0xff]  ;;  %v173_v39 = vld [vmem:[#allocation2 + $0x200] sm:$0xff] }
  0x70   :  { %458 = vmatprep.subr.mxu0 %v200_v3  ;;  %528 = vmatpush2.msra.mxu1 %v298_v4  ;;  %v271_v40 = vld [vmem:[#allocation2 + $0x510] sm:$0xff]  ;;  %v172_v41 = vld [vmem:[#allocation2 + $0x1f8] sm:$0xff]  ;;  %v269_v42 = vld [vmem:[#allocation2 + $0x500] sm:$0xff] }
  0x71   :  { %459 = vmatpush2.msra.mxu0 %v199_v5  ;;  %529 = vmatprep.subr.mxu1 %v296_v6  ;;  %v170_v43 = vld [vmem:[#allocation2 + $0x1e8] sm:$0xff]  ;;  %v268_v44 = vld [vmem:[#allocation2 + $0x4f8] sm:$0xff]  ;;  %v169_v45 = vld [vmem:[#allocation2 + $0x1e0] sm:$0xff] }
  0x72   :  { %460 = vmatprep.subr.mxu0 %v197_v7  ;;  %530 = vmatpush2.msra.mxu1 %v295_v8  ;;  %v266_v46 = vld [vmem:[#allocation2 + $0x4e8] sm:$0xff]  ;;  %v167_v47 = vld [vmem:[#allocation2 + $0x1d0] sm:$0xff]  ;;  %v265_v48 = vld [vmem:[#allocation2 + $0x4e0] sm:$0xff] }
  0x73   :  { %461 = vmatpush2.msra.mxu0 %v196_v9  ;;  %531 = vmatprep.subr.mxu1 %v293_v10  ;;  %v166_v49 = vld [vmem:[#allocation2 + $0x1c8] sm:$0xff]  ;;  %v263_v50 = vld [vmem:[#allocation2 + $0x4d0] sm:$0xff]  ;;  %v164_v51 = vld [vmem:[#allocation2 + $0x1b8] sm:$0xff] }
  0x74   :  { %462 = vmatprep.subr.mxu0 %v194_v11  ;;  %532 = vmatpush2.msra.mxu1 %v292_v12  ;;  %v262_v52 = vld [vmem:[#allocation2 + $0x4c8] sm:$0xff]  ;;  %v163_v53 = vld [vmem:[#allocation2 + $0x1b0] sm:$0xff]  ;;  %v260_v54 = vld [vmem:[#allocation2 + $0x4b8] sm:$0xff] }
  0x75   :  { %463 = vmatpush2.msra.mxu0 %v193_v13  ;;  %533 = vmatprep.subr.mxu1 %v290_v14  ;;  %v161_v55 = vld [vmem:[#allocation2 + $0x1a0] sm:$0xff]  ;;  %v259_v56 = vld [vmem:[#allocation2 + $0x4b0] sm:$0xff]  ;;  %v160_v57 = vld [vmem:[#allocation2 + $0x198] sm:$0xff] }
  0x76   :  { %464 = vmatprep.subr.mxu0 %v191_v15  ;;  %534 = vmatpush2.msra.mxu1 %v289_v16  ;;  %v257_v58 = vld [vmem:[#allocation2 + $0x4a0] sm:$0xff]  ;;  %v158_v59 = vld [vmem:[#allocation2 + $0x188] sm:$0xff]  ;;  %v256_v62 = vld [vmem:[#allocation2 + $0x498] sm:$0xff] }
  0x77   :  { %465 = vmatpush2.msra.mxu0 %v190_v17  ;;  %535 = vmatprep.subr.mxu1 %v287_v18  ;;  %v1760_v60 = vld [vmem:[%s1844_s0 + $0x8] sm:$0xff]  ;;  %v157_v61 = vld [vmem:[#allocation2 + $0x180] sm:$0xff]  ;;  %v347_v1 = vld [vmem:[#allocation2 + $0x770] sm:$0xff] }
  0x78   :  { %466 = vmatprep.subr.mxu0 %v188_v19  ;;  %536 = vmatpush2.msra.mxu1 %v286_v20  ;;  %v1765_v63 = vld [vmem:[%s1844_s0] sm:$0xff]  ;;  %v254_v0 = vld [vmem:[#allocation2 + $0x488] sm:$0xff]  ;;  %v1771_v3 = vld [vmem:[%s1844_s0 + $0x18] sm:$0xff] }
  0x79   :  { %467 = vmatpush2.msra.mxu0 %v187_v21  ;;  %537 = vmatprep.subr.mxu1 %v284_v22  ;;  %v253_v2 = vld [vmem:[#allocation2 + $0x480] sm:$0xff]  ;;  %v346_v4 = vld [vmem:[#allocation2 + $0x768] sm:$0xff]  ;;  %v1777_v5 = vld [vmem:[%s1844_s0 + $0x10] sm:$0xff] }
  0x7a   :  { %468 = vmatprep.subr.mxu0 %v185_v23  ;;  %538 = vmatpush2.msra.mxu1 %v283_v24  ;;  %v344_v6 = vld [vmem:[#allocation2 + $0x758] sm:$0xff]  ;;  %v343_v7 = vld [vmem:[#allocation2 + $0x750] sm:$0xff]  ;;  %v341_v9 = vld [vmem:[#allocation2 + $0x740] sm:$0xff] }
  0x7b   :  { %469 = vmatpush2.msra.mxu0 %v184_v25  ;;  %539 = vmatprep.subr.mxu1 %v281_v26  ;;  %v204_v8 = vld [vmem:[#allocation2 + $0x2f8] sm:$0xff]  ;;  %v201_v12 = vld [vmem:[#allocation2 + $0x2e0] sm:$0xff]  ;;  %v338_v13 = vld [vmem:[#allocation2 + $0x728] sm:$0xff] }
  0x7c   :  { %470 = vmatprep.subr.mxu0 %v182_v27  ;;  %540 = vmatpush2.msra.mxu1 %v280_v28  ;;  %v156_v10 = vld [vmem:[#allocation2 + $0x178] sm:$0xff]  ;;  %v153_v14 = vld [vmem:[#allocation2 + $0x160] sm:$0xff]  ;;  %v198_v16 = vld [vmem:[#allocation2 + $0x2c8] sm:$0xff] }
  0x7d   :  { %471 = vmatpush2.msra.mxu0 %v181_v29  ;;  %541 = vmatprep.subr.mxu1 %v278_v30  ;;  %v340_v11 = vld [vmem:[#allocation2 + $0x738] sm:$0xff]  ;;  %v337_v15 = vld [vmem:[#allocation2 + $0x720] sm:$0xff]  ;;  %v335_v17 = vld [vmem:[#allocation2 + $0x710] sm:$0xff] }
  0x7e   :  { %472 = vmatprep.subr.mxu0 %v179_v31  ;;  %542 = vmatpush2.msra.mxu1 %v277_v32  ;;  %v150_v18 = vld [vmem:[#allocation2 + $0x148] sm:$0xff]  ;;  %v195_v20 = vld [vmem:[#allocation2 + $0x2b0] sm:$0xff]  ;;  %v332_v21 = vld [vmem:[#allocation2 + $0x6f8] sm:$0xff] }
  0x7f   :  { %473 = vmatpush2.msra.mxu0 %v178_v33  ;;  %543 = vmatprep.subr.mxu1 %v275_v34  ;;  %v334_v19 = vld [vmem:[#allocation2 + $0x708] sm:$0xff]  ;;  %v147_v22 = vld [vmem:[#allocation2 + $0x130] sm:$0xff]  ;;  %v192_v24 = vld [vmem:[#allocation2 + $0x298] sm:$0xff] }
  0x80   :  { %474 = vmatprep.subr.mxu0 %v176_v35  ;;  %544 = vmatpush2.msra.mxu1 %v274_v36  ;;  %v331_v23 = vld [vmem:[#allocation2 + $0x6f0] sm:$0xff]  ;;  %v329_v25 = vld [vmem:[#allocation2 + $0x6e0] sm:$0xff]  ;;  %v144_v26 = vld [vmem:[#allocation2 + $0x118] sm:$0xff] }
  0x81   :  { %475 = vmatpush2.msra.mxu0 %v175_v37  ;;  %545 = vmatprep.subr.mxu1 %v272_v38  ;;  %v328_v27 = vld [vmem:[#allocation2 + $0x6d8] sm:$0xff]  ;;  %v189_v28 = vld [vmem:[#allocation2 + $0x280] sm:$0xff]  ;;  %v326_v29 = vld [vmem:[#allocation2 + $0x6c8] sm:$0xff] }
  0x82   :  { %476 = vmatprep.subr.mxu0 %v173_v39  ;;  %546 = vmatpush2.msra.mxu1 %v271_v40  ;;  %v141_v30 = vld [vmem:[#allocation2 + $0x100] sm:$0xff]  ;;  %v186_v32 = vld [vmem:[#allocation2 + $0x268] sm:$0xff]  ;;  %v323_v33 = vld [vmem:[#allocation2 + $0x6b0] sm:$0xff] }
  0x83   :  { %477 = vmatpush2.msra.mxu0 %v172_v41  ;;  %547 = vmatprep.subr.mxu1 %v269_v42  ;;  %v325_v31 = vld [vmem:[#allocation2 + $0x6c0] sm:$0xff]  ;;  %v138_v34 = vld [vmem:[#allocation2 + $0xe8] sm:$0xff]  ;;  %v183_v36 = vld [vmem:[#allocation2 + $0x250] sm:$0xff] }
  0x84   :  { %478 = vmatprep.subr.mxu0 %v170_v43  ;;  %548 = vmatpush2.msra.mxu1 %v268_v44  ;;  %v322_v35 = vld [vmem:[#allocation2 + $0x6a8] sm:$0xff]  ;;  %v320_v37 = vld [vmem:[#allocation2 + $0x698] sm:$0xff]  ;;  %v135_v38 = vld [vmem:[#allocation2 + $0xd0] sm:$0xff] }
  0x85   :  { %479 = vmatpush2.msra.mxu0 %v169_v45  ;;  %549 = vmatprep.subr.mxu1 %v266_v46  ;;  %v319_v39 = vld [vmem:[#allocation2 + $0x690] sm:$0xff]  ;;  %v180_v40 = vld [vmem:[#allocation2 + $0x238] sm:$0xff]  ;;  %v317_v41 = vld [vmem:[#allocation2 + $0x680] sm:$0xff] }
  0x86   :  { %480 = vmatprep.subr.mxu0 %v167_v47  ;;  %550 = vmatpush2.msra.mxu1 %v265_v48  ;;  %v132_v42 = vld [vmem:[#allocation2 + $0xb8] sm:$0xff]  ;;  %v177_v44 = vld [vmem:[#allocation2 + $0x220] sm:$0xff]  ;;  %v314_v45 = vld [vmem:[#allocation2 + $0x668] sm:$0xff] }
  0x87   :  { %481 = vmatpush2.msra.mxu0 %v166_v49  ;;  %551 = vmatprep.subr.mxu1 %v263_v50  ;;  %v316_v43 = vld [vmem:[#allocation2 + $0x678] sm:$0xff]  ;;  %v129_v46 = vld [vmem:[#allocation2 + $0xa0] sm:$0xff]  ;;  %v174_v48 = vld [vmem:[#allocation2 + $0x208] sm:$0xff] }
  0x88   :  { %482 = vmatprep.subr.mxu0 %v164_v51  ;;  %552 = vmatpush2.msra.mxu1 %v262_v52  ;;  %v313_v47 = vld [vmem:[#allocation2 + $0x660] sm:$0xff]  ;;  %v311_v49 = vld [vmem:[#allocation2 + $0x650] sm:$0xff]  ;;  %v126_v50 = vld [vmem:[#allocation2 + $0x88] sm:$0xff] }
  0x89   :  { %483 = vmatpush2.msra.mxu0 %v163_v53  ;;  %553 = vmatprep.subr.mxu1 %v260_v54  ;;  %v310_v51 = vld [vmem:[#allocation2 + $0x648] sm:$0xff]  ;;  %v171_v52 = vld [vmem:[#allocation2 + $0x1f0] sm:$0xff]  ;;  %v308_v53 = vld [vmem:[#allocation2 + $0x638] sm:$0xff] }
  0x8a   :  { %484 = vmatprep.subr.mxu0 %v161_v55  ;;  %554 = vmatpush2.msra.mxu1 %v259_v56  ;;  %v123_v54 = vld [vmem:[#allocation2 + $0x70] sm:$0xff]  ;;  %v168_v56 = vld [vmem:[#allocation2 + $0x1d8] sm:$0xff] }
  0x8b   :  { %485 = vmatpush2.msra.mxu0 %v160_v57  ;;  %555 = vmatprep.subr.mxu1 %v257_v58  ;;  %v307_v55 = vld [vmem:[#allocation2 + $0x630] sm:$0xff]  ;;  %v305_v57 = vld [vmem:[#allocation2 + $0x620] sm:$0xff]  ;;  %v120_v58 = vld [vmem:[#allocation2 + $0x58] sm:$0xff] }
  0x8c   :  { %486 = vmatprep.subr.mxu0 %v158_v59  ;;  %488 = vmatprep.mubr.f32.mxu0 %v1760_v60  ;;  %v304_v59 = vld [vmem:[#allocation2 + $0x618] sm:$0xff] }
  0x8d   :  { %487 = vmatpush2.msra.mxu0 %v157_v61  ;;  %556 = vmatpush2.msra.mxu1 %v256_v62  ;;  %v165_v61 = vld [vmem:[#allocation2 + $0x1c0] sm:$0xff]  ;;  %v302_v62 = vld [vmem:[#allocation2 + $0x608] sm:$0xff] }
  0x8e   :  { %489 = vmatmul.mubr.f32.vlgmr.msra.gmra.mxu0 %v1765_v63  ;;  %557 = vmatprep.subr.mxu1 %v254_v0  ;;  %v117_v0 = vld [vmem:[#allocation2 + $0x40] sm:$0xff] }
  0x8f   :  { %566 = vmatprep.subr.mxu0 %v347_v1  ;;  %558 = vmatpush2.msra.mxu1 %v253_v2  ;;  %v301_v1 = vld [vmem:[#allocation2 + $0x600] sm:$0xff]  ;;  %v162_v2 = vld [vmem:[#allocation2 + $0x1a8] sm:$0xff] }
  0x90   :  { %559 = vmatprep.mubr.f32.mxu1 %v1771_v3  ;;  %567 = vmatpush1.msra.mxu0 %v346_v4  ;;  %v395_v4 = vld [vmem:[#allocation2 + $0x8f0] sm:$0xff] }
  0x91   :  { %560 = vmatmul.mubr.f32.vlgmr.msra.gmra.mxu1 %v1777_v5  ;;  %568 = vmatprep.subr.mxu0 %v344_v6  ;;  %v114_v6 = vld [vmem:[#allocation2 + $0x28] sm:$0xff] }
  0x92   :  { %569 = vmatpush1.msra.mxu0 %v343_v7  ;;  %1293 = vmatprep.subr.mxu1 %v204_v8  ;;  %v394_v7 = vld [vmem:[#allocation2 + $0x8e8] sm:$0xff]  ;;  %v159_v8 = vld [vmem:[#allocation2 + $0x190] sm:$0xff] }
  0x93   :  { %570 = vmatprep.subr.mxu0 %v341_v9  ;;  %1294 = vmatpush3.msra.mxu1 %v156_v10  ;;  %v392_v9 = vld [vmem:[#allocation2 + $0x8d8] sm:$0xff]  ;;  %v111_v10 = vld [vmem:[#allocation2 + $0x10] sm:$0xff] }
  0x94   :  { %571 = vmatpush1.msra.mxu0 %v340_v11  ;;  %1295 = vmatprep.subr.mxu1 %v201_v12  ;;  %v391_v11 = vld [vmem:[#allocation2 + $0x8d0] sm:$0xff]  ;;  %v300_v12 = vld [vmem:[#allocation2 + $0x5f8] sm:$0xff] }
  0x95   :  { %572 = vmatprep.subr.mxu0 %v338_v13  ;;  %1296 = vmatpush3.msra.mxu1 %v153_v14  ;;  %v389_v13 = vld [vmem:[#allocation2 + $0x8c0] sm:$0xff]  ;;  %v388_v14 = vld [vmem:[#allocation2 + $0x8b8] sm:$0xff] }
  0x96   :  { %573 = vmatpush1.msra.mxu0 %v337_v15  ;;  %1297 = vmatprep.subr.mxu1 %v198_v16  ;;  %v252_v15 = vld [vmem:[#allocation2 + $0x478] sm:$0xff]  ;;  %v386_v16 = vld [vmem:[#allocation2 + $0x8a8] sm:$0xff] }
  0x97   :  { %574 = vmatprep.subr.mxu0 %v335_v17  ;;  %1298 = vmatpush3.msra.mxu1 %v150_v18  ;;  %v297_v17 = vld [vmem:[#allocation2 + $0x5e0] sm:$0xff] }
  0x98   :  { %575 = vmatpush1.msra.mxu0 %v334_v19  ;;  %1299 = vmatprep.subr.mxu1 %v195_v20  ;;  %v385_v18 = vld [vmem:[#allocation2 + $0x8a0] sm:$0xff]  ;;  %v383_v20 = vld [vmem:[#allocation2 + $0x890] sm:$0xff] }
  0x99   :  { %576 = vmatprep.subr.mxu0 %v332_v21  ;;  %1300 = vmatpush3.msra.mxu1 %v147_v22  ;;  %v249_v19 = vld [vmem:[#allocation2 + $0x460] sm:$0xff]  ;;  %v294_v21 = vld [vmem:[#allocation2 + $0x5c8] sm:$0xff] }
  0x9a   :  { %577 = vmatpush1.msra.mxu0 %v331_v23  ;;  %1301 = vmatprep.subr.mxu1 %v192_v24  ;;  %v382_v22 = vld [vmem:[#allocation2 + $0x888] sm:$0xff]  ;;  %v380_v24 = vld [vmem:[#allocation2 + $0x878] sm:$0xff] }
  0x9b   :  { %578 = vmatprep.subr.mxu0 %v329_v25  ;;  %1302 = vmatpush3.msra.mxu1 %v144_v26  ;;  %v246_v23 = vld [vmem:[#allocation2 + $0x448] sm:$0xff]  ;;  %v379_v25 = vld [vmem:[#allocation2 + $0x870] sm:$0xff] }
  0x9c   :  { %579 = vmatpush1.msra.mxu0 %v328_v27  ;;  %1303 = vmatprep.subr.mxu1 %v189_v28  ;;  %v243_v26 = vld [vmem:[#allocation2 + $0x430] sm:$0xff]  ;;  %v377_v27 = vld [vmem:[#allocation2 + $0x860] sm:$0xff]  ;;  %v376_v28 = vld [vmem:[#allocation2 + $0x858] sm:$0xff] }
  0x9d   :  { %580 = vmatprep.subr.mxu0 %v326_v29  ;;  %1304 = vmatpush3.msra.mxu1 %v141_v30  ;;  %v240_v29 = vld [vmem:[#allocation2 + $0x418] sm:$0xff]  ;;  %v374_v30 = vld [vmem:[#allocation2 + $0x848] sm:$0xff] }
  0x9e   :  { %581 = vmatpush1.msra.mxu0 %v325_v31  ;;  %1305 = vmatprep.subr.mxu1 %v186_v32  ;;  %v285_v31 = vld [vmem:[#allocation2 + $0x580] sm:$0xff] }
  0x9f   :  { %582 = vmatprep.subr.mxu0 %v323_v33  ;;  %1306 = vmatpush3.msra.mxu1 %v138_v34  ;;  %v373_v32 = vld [vmem:[#allocation2 + $0x840] sm:$0xff]  ;;  %v371_v34 = vld [vmem:[#allocation2 + $0x830] sm:$0xff] }
  0xa0   :  { %583 = vmatpush1.msra.mxu0 %v322_v35  ;;  %1307 = vmatprep.subr.mxu1 %v183_v36  ;;  %v237_v33 = vld [vmem:[#allocation2 + $0x400] sm:$0xff]  ;;  %v282_v35 = vld [vmem:[#allocation2 + $0x568] sm:$0xff] }
  0xa1   :  { %584 = vmatprep.subr.mxu0 %v320_v37  ;;  %1308 = vmatpush3.msra.mxu1 %v135_v38  ;;  %v370_v36 = vld [vmem:[#allocation2 + $0x828] sm:$0xff]  ;;  %v368_v38 = vld [vmem:[#allocation2 + $0x818] sm:$0xff] }
  0xa2   :  { %585 = vmatpush1.msra.mxu0 %v319_v39  ;;  %1309 = vmatprep.subr.mxu1 %v180_v40  ;;  %v234_v37 = vld [vmem:[#allocation2 + $0x3e8] sm:$0xff]  ;;  %v279_v39 = vld [vmem:[#allocation2 + $0x550] sm:$0xff] }
  0xa3   :  { %586 = vmatprep.subr.mxu0 %v317_v41  ;;  %1310 = vmatpush3.msra.mxu1 %v132_v42  ;;  %v367_v40 = vld [vmem:[#allocation2 + $0x810] sm:$0xff]  ;;  %v365_v42 = vld [vmem:[#allocation2 + $0x800] sm:$0xff] }
  0xa4   :  { %587 = vmatpush1.msra.mxu0 %v316_v43  ;;  %1311 = vmatprep.subr.mxu1 %v177_v44  ;;  %v231_v41 = vld [vmem:[#allocation2 + $0x3d0] sm:$0xff]  ;;  %v276_v43 = vld [vmem:[#allocation2 + $0x538] sm:$0xff] }
  0xa5   :  { %588 = vmatprep.subr.mxu0 %v314_v45  ;;  %1312 = vmatpush3.msra.mxu1 %v129_v46  ;;  %v364_v44 = vld [vmem:[#allocation2 + $0x7f8] sm:$0xff]  ;;  %v362_v46 = vld [vmem:[#allocation2 + $0x7e8] sm:$0xff] }
  0xa6   :  { %589 = vmatpush1.msra.mxu0 %v313_v47  ;;  %1313 = vmatprep.subr.mxu1 %v174_v48  ;;  %v228_v45 = vld [vmem:[#allocation2 + $0x3b8] sm:$0xff]  ;;  %v273_v47 = vld [vmem:[#allocation2 + $0x520] sm:$0xff] }
  0xa7   :  { %590 = vmatprep.subr.mxu0 %v311_v49  ;;  %1314 = vmatpush3.msra.mxu1 %v126_v50  ;;  %v361_v48 = vld [vmem:[#allocation2 + $0x7e0] sm:$0xff]  ;;  %v359_v50 = vld [vmem:[#allocation2 + $0x7d0] sm:$0xff] }
  0xa8   :  { %591 = vmatpush1.msra.mxu0 %v310_v51  ;;  %1315 = vmatprep.subr.mxu1 %v171_v52  ;;  %v225_v49 = vld [vmem:[#allocation2 + $0x3a0] sm:$0xff]  ;;  %v270_v51 = vld [vmem:[#allocation2 + $0x508] sm:$0xff] }
  0xa9   :  { %592 = vmatprep.subr.mxu0 %v308_v53  ;;  %1316 = vmatpush3.msra.mxu1 %v123_v54  ;;  %v358_v52 = vld [vmem:[#allocation2 + $0x7c8] sm:$0xff]  ;;  %v356_v54 = vld [vmem:[#allocation2 + $0x7b8] sm:$0xff] }
  0xaa   :  { %593 = vmatpush1.msra.mxu0 %v307_v55  ;;  %1317 = vmatprep.subr.mxu1 %v168_v56  ;;  %v222_v53 = vld [vmem:[#allocation2 + $0x388] sm:$0xff]  ;;  %v267_v55 = vld [vmem:[#allocation2 + $0x4f0] sm:$0xff] }
  0xab   :  { %594 = vmatprep.subr.mxu0 %v305_v57  ;;  %1318 = vmatpush3.msra.mxu1 %v120_v58  ;;  %v355_v56 = vld [vmem:[#allocation2 + $0x7b0] sm:$0xff]  ;;  %v353_v58 = vld [vmem:[#allocation2 + $0x7a0] sm:$0xff] }
  0xac   :  { %595 = vmatpush1.msra.mxu0 %v304_v59  ;;  %1319 = vmatprep.subr.mxu1 %v165_v61  ;;  %v219_v57 = vld [vmem:[#allocation2 + $0x370] sm:$0xff]  ;;  %v264_v59 = vld [vmem:[#allocation2 + $0x4d8] sm:$0xff] }
  0xad   :  { %596 = vmatprep.subr.mxu0 %v302_v62  ;;  %1320 = vmatpush3.msra.mxu1 %v117_v0  ;;  %v352_v61 = vld [vmem:[#allocation2 + $0x798] sm:$0xff]  ;;  %v350_v0 = vld [vmem:[#allocation2 + $0x788] sm:$0xff] }
  0xae   :  { %597 = vmatpush1.msra.mxu0 %v301_v1  ;;  %1321 = vmatprep.subr.mxu1 %v162_v2  ;;  %v216_v62 = vld [vmem:[#allocation2 + $0x358] sm:$0xff]  ;;  %v261_v1 = vld [vmem:[#allocation2 + $0x4c0] sm:$0xff] }
  0xaf   :  { %598 = vmatprep.subr.mxu0 %v395_v4  ;;  %1322 = vmatpush3.msra.mxu1 %v114_v6  ;;  %v349_v2 = vld [vmem:[#allocation2 + $0x780] sm:$0xff]  ;;  %v107_v6 = vld [vmem:[%s1844_s0 + $0x28] sm:$0xff] }
  0xb0   :  { %599 = vmatpush2.msra.mxu0 %v394_v7  ;;  %1323 = vmatprep.subr.mxu1 %v159_v8  ;;  %v213_v4 = vld [vmem:[#allocation2 + $0x340] sm:$0xff]  ;;  %v258_v7 = vld [vmem:[#allocation2 + $0x4a8] sm:$0xff] }
  0xb1   :  { %600 = vmatprep.subr.mxu0 %v392_v9  ;;  %1324 = vmatpush3.msra.mxu1 %v111_v10  ;;  %v1789_v8 = vld [vmem:[%s1844_s0 + $0x20] sm:$0xff]  ;;  %v210_v10 = vld [vmem:[#allocation2 + $0x328] sm:$0xff] }
  0xb2   :  { %601 = vmatpush2.msra.mxu0 %v391_v11  ;;  %772 = vmatprep.mubr.f32.mxu1 %v1760_v60  ;;  %v291_v60 = vld [vmem:[#allocation2 + $0x5b0] sm:$0xff]  ;;  %v401_v9 = vld [vmem:[#allocation2 + $0x920] sm:$0xff]  ;;  %v400_v11 = vld [vmem:[#allocation2 + $0x918] sm:$0xff] }
  0xb3   :  { %1328 = vmatprep.subr.mxu1 %v300_v12  ;;  %602 = vmatprep.subr.mxu0 %v389_v13  ;;  %v255_v12 = vld [vmem:[#allocation2 + $0x490] sm:$0xff]  ;;  %v398_v13 = vld [vmem:[#allocation2 + $0x908] sm:$0xff] }
  0xb4   :  { %773 = vmatmul.mubr.f32.vlgmr.msra.gmra.mxu1 %v1765_v63  ;;  %603 = vmatpush2.msra.mxu0 %v388_v14  ;;  %v288_v63 = vld [vmem:[#allocation2 + $0x598] sm:$0xff]  ;;  %v207_v14 = vld [vmem:[#allocation2 + $0x310] sm:$0xff] }
  0xb5   :  { %1329 = vmatpush3.msra.mxu1 %v252_v15  ;;  %604 = vmatprep.subr.mxu0 %v386_v16  ;;  %v397_v15 = vld [vmem:[#allocation2 + $0x900] sm:$0xff]  ;;  %v108_v16 = vld [vmem:[%s1844_s0 + $0x30] sm:$0xff] }
  0xb6   :  { %1330 = vmatprep.subr.mxu1 %v297_v17  ;;  %605 = vmatpush2.msra.mxu0 %v385_v18  ;;  %v396_v17 = vld [vmem:[#allocation2 + $0x8f8] sm:$0xff] }
  0xb7   :  { %1331 = vmatpush3.msra.mxu1 %v249_v19  ;;  %606 = vmatprep.subr.mxu0 %v383_v20  ;;  %v348_v18 = vld [vmem:[#allocation2 + $0x778] sm:$0xff]  ;;  %v1697_v19 = vmov 0.0   ;;  %v393_v20 = vld [vmem:[#allocation2 + $0x8e0] sm:$0xff] }
  0xb8   :  { %1332 = vmatprep.subr.mxu1 %v294_v21  ;;  %607 = vmatpush2.msra.mxu0 %v382_v22  ;;  %v345_v21 = vld [vmem:[#allocation2 + $0x760] sm:$0xff]  ;;  %v402_v22 = vld [vmem:[#allocation2 + $0x928] sm:$0xff] }
  0xb9   :  { %1333 = vmatpush3.msra.mxu1 %v246_v23  ;;  %608 = vmatprep.subr.mxu0 %v380_v24  ;;  %v390_v23 = vld [vmem:[#allocation2 + $0x8c8] sm:$0xff] }
  0xba   :  { %1334 = vmatprep.subr.mxu1 %v291_v60  ;;  %609 = vmatpush2.msra.mxu0 %v379_v25  ;;  %v342_v24 = vld [vmem:[#allocation2 + $0x748] sm:$0xff]  ;;  %v387_v60 = vld [vmem:[#allocation2 + $0x8b0] sm:$0xff] }
  0xbb   :  { %1335 = vmatpush3.msra.mxu1 %v243_v26  ;;  %610 = vmatprep.subr.mxu0 %v377_v27  ;;  %v339_v25 = vld [vmem:[#allocation2 + $0x730] sm:$0xff]  ;;  %v336_v27 = vld [vmem:[#allocation2 + $0x718] sm:$0xff] }
  0xbc   :  { %1336 = vmatprep.subr.mxu1 %v288_v63  ;;  %611 = vmatpush2.msra.mxu0 %v376_v28  ;;  %v1022_v26 = vld [vmem:[#allocation6 + $0xf8] sm:$0xff]  ;;  %v381_v28 = vld [vmem:[#allocation2 + $0x880] sm:$0xff] }
  0xbd   :  { %1337 = vmatpush3.msra.mxu1 %v240_v29  ;;  %612 = vmatprep.subr.mxu0 %v374_v30  ;;  %v1006_v63 = vld [vmem:[#allocation6 + $0x78] sm:$0xff]  ;;  %v1021_v29 = vld [vmem:[#allocation6 + $0xf0] sm:$0xff] }
  0xbe   :  { %1338 = vmatprep.subr.mxu1 %v285_v31  ;;  %613 = vmatpush2.msra.mxu0 %v373_v32  ;;  %v333_v30 = vld [vmem:[#allocation2 + $0x700] sm:$0xff]  ;;  %v378_v32 = vld [vmem:[#allocation2 + $0x868] sm:$0xff] }
  0xbf   :  { %1339 = vmatpush3.msra.mxu1 %v237_v33  ;;  %614 = vmatprep.subr.mxu0 %v371_v34  ;;  %v1005_v31 = vld [vmem:[#allocation6 + $0x70] sm:$0xff]  ;;  %v1020_v33 = vld [vmem:[#allocation6 + $0xe8] sm:$0xff] }
  0xc0   :  { %1340 = vmatprep.subr.mxu1 %v282_v35  ;;  %615 = vmatpush2.msra.mxu0 %v370_v36  ;;  %v330_v34 = vld [vmem:[#allocation2 + $0x6e8] sm:$0xff]  ;;  %v1004_v35 = vld [vmem:[#allocation6 + $0x68] sm:$0xff]  ;;  %v375_v36 = vld [vmem:[#allocation2 + $0x850] sm:$0xff] }
  0xc1   :  { %1341 = vmatpush3.msra.mxu1 %v234_v37  ;;  %616 = vmatprep.subr.mxu0 %v368_v38  ;;  %v1019_v37 = vld [vmem:[#allocation6 + $0xe0] sm:$0xff] }
  0xc2   :  { %1342 = vmatprep.subr.mxu1 %v279_v39  ;;  %617 = vmatpush2.msra.mxu0 %v367_v40  ;;  %v327_v38 = vld [vmem:[#allocation2 + $0x6d0] sm:$0xff]  ;;  %v372_v40 = vld [vmem:[#allocation2 + $0x838] sm:$0xff] }
  0xc3   :  { %1343 = vmatpush3.msra.mxu1 %v231_v41  ;;  %618 = vmatprep.subr.mxu0 %v365_v42  ;;  %v1003_v39 = vld [vmem:[#allocation6 + $0x60] sm:$0xff]  ;;  %v1018_v41 = vld [vmem:[#allocation6 + $0xd8] sm:$0xff] }
  0xc4   :  { %1344 = vmatprep.subr.mxu1 %v276_v43  ;;  %619 = vmatpush2.msra.mxu0 %v364_v44  ;;  %v324_v42 = vld [vmem:[#allocation2 + $0x6b8] sm:$0xff]  ;;  %v1002_v43 = vld [vmem:[#allocation6 + $0x58] sm:$0xff]  ;;  %v369_v44 = vld [vmem:[#allocation2 + $0x820] sm:$0xff] }
  0xc5   :  { %1345 = vmatpush3.msra.mxu1 %v228_v45  ;;  %620 = vmatprep.subr.mxu0 %v362_v46  ;;  %v1017_v45 = vld [vmem:[#allocation6 + $0xd0] sm:$0xff] }
  0xc6   :  { %1346 = vmatprep.subr.mxu1 %v273_v47  ;;  %621 = vmatpush2.msra.mxu0 %v361_v48  ;;  %v321_v46 = vld [vmem:[#allocation2 + $0x6a0] sm:$0xff]  ;;  %v366_v48 = vld [vmem:[#allocation2 + $0x808] sm:$0xff] }
  0xc7   :  { %1347 = vmatpush3.msra.mxu1 %v225_v49  ;;  %622 = vmatprep.subr.mxu0 %v359_v50  ;;  %v1001_v47 = vld [vmem:[#allocation6 + $0x50] sm:$0xff]  ;;  %v1016_v49 = vld [vmem:[#allocation6 + $0xc8] sm:$0xff] }
  0xc8   :  { %1348 = vmatprep.subr.mxu1 %v270_v51  ;;  %623 = vmatpush2.msra.mxu0 %v358_v52  ;;  %v318_v50 = vld [vmem:[#allocation2 + $0x688] sm:$0xff]  ;;  %v1000_v51 = vld [vmem:[#allocation6 + $0x48] sm:$0xff]  ;;  %v363_v52 = vld [vmem:[#allocation2 + $0x7f0] sm:$0xff] }
  0xc9   :  { %1349 = vmatpush3.msra.mxu1 %v222_v53  ;;  %624 = vmatprep.subr.mxu0 %v356_v54  ;;  %v1015_v53 = vld [vmem:[#allocation6 + $0xc0] sm:$0xff] }
  0xca   :  { %1350 = vmatprep.subr.mxu1 %v267_v55  ;;  %625 = vmatpush2.msra.mxu0 %v355_v56  ;;  %v315_v54 = vld [vmem:[#allocation2 + $0x670] sm:$0xff]  ;;  %v360_v56 = vld [vmem:[#allocation2 + $0x7d8] sm:$0xff] }
  0xcb   :  { %1351 = vmatpush3.msra.mxu1 %v219_v57  ;;  %626 = vmatprep.subr.mxu0 %v353_v58  ;;  %v999_v55 = vld [vmem:[#allocation6 + $0x40] sm:$0xff]  ;;  %v1014_v57 = vld [vmem:[#allocation6 + $0xb8] sm:$0xff] }
  0xcc   :  { %1352 = vmatprep.subr.mxu1 %v264_v59  ;;  %627 = vmatpush2.msra.mxu0 %v352_v61  ;;  %v312_v58 = vld [vmem:[#allocation2 + $0x658] sm:$0xff]  ;;  %v998_v59 = vld [vmem:[#allocation6 + $0x38] sm:$0xff]  ;;  %v357_v61 = vld [vmem:[#allocation2 + $0x7c0] sm:$0xff] }
  0xcd   :  { %1353 = vmatpush3.msra.mxu1 %v216_v62  ;;  %628 = vmatprep.subr.mxu0 %v350_v0  ;;  %v1013_v62 = vld [vmem:[#allocation6 + $0xb0] sm:$0xff] }
  0xce   :  { %1354 = vmatprep.subr.mxu1 %v261_v1  ;;  %629 = vmatpush2.msra.mxu0 %v349_v2  ;;  %v309_v0 = vld [vmem:[#allocation2 + $0x640] sm:$0xff]  ;;  %v354_v1 = vld [vmem:[#allocation2 + $0x7a8] sm:$0xff] }
  0xcf   :  { %1355 = vmatpush3.msra.mxu1 %v213_v4  ;;  %630 = vmatprep.mubr.f32.mxu0 %v107_v6  ;;  %v306_v2 = vld [vmem:[#allocation2 + $0x628] sm:$0xff]  ;;  %v351_v4 = vld [vmem:[#allocation2 + $0x790] sm:$0xff] }
  0xd0   :  { %1356 = vmatprep.subr.mxu1 %v258_v7  ;;  %631 = vmatmul.mubr.f32.vlgmr.msra.gmra.mxu0 %v1789_v8  ;;  %v997_v7 = vld [vmem:[#allocation6 + $0x30] sm:$0xff] }
  0xd1   :  { %665 = vmatprep.subr.mxu0 %v401_v9  ;;  %1357 = vmatpush3.msra.mxu1 %v210_v10  ;;  %v1012_v9 = vld [vmem:[#allocation6 + $0xa8] sm:$0xff] }
  0xd2   :  { %666 = vmatpush1.msra.mxu0 %v400_v11  ;;  %1358 = vmatprep.subr.mxu1 %v255_v12  ;;  %v996_v10 = vld [vmem:[#allocation6 + $0x28] sm:$0xff]  ;;  %v1011_v11 = vld [vmem:[#allocation6 + $0xa0] sm:$0xff] }
  0xd3   :  { %667 = vmatprep.subr.mxu0 %v398_v13  ;;  %1359 = vmatpush3.msra.mxu1 %v207_v14  ;;  %v995_v12 = vld [vmem:[#allocation6 + $0x20] sm:$0xff]  ;;  %v1010_v13 = vld [vmem:[#allocation6 + $0x98] sm:$0xff] }
  0xd4   :  { %842 = vmatprep.mubr.f32.mxu1 %v1771_v3  ;;  %668 = vmatpush1.msra.mxu0 %v397_v15  ;;  %v399_v3 = vld [vmem:[#allocation2 + $0x910] sm:$0xff]  ;;  %v1009_v15 = vld [vmem:[#allocation6 + $0x90] sm:$0xff] }
  0xd5   :  { %701 = vmatprep.mubr.f32.mxu0 %v1697_v19  ;;  %843 = vmatmul.mubr.f32.vlgmr.msra.gmra.mxu1 %v1777_v5  ;;  %v384_v5 = vld [vmem:[#allocation2 + $0x898] sm:$0xff]  ;;  %v994_v14 = vld [vmem:[#allocation6 + $0x18] sm:$0xff] }
  0xd6   :  { %1289 = vmatmul.mubr.msk.f32.vlgmr.msra.gmra.mxu0 %vm420_vm0, %v108_v16  ;;  %1363 = vmatprep.subr.mxu0 %v396_v17  ;;  %v992_v17 = vld [vmem:[#allocation6 + $0x8] sm:$0xff] }
  0xd7   :  { %1364 = vmatpush3.msra.mxu0 %v348_v18  ;;  %912 = vmatprep.mubr.f32.mxu0 %v107_v6  ;;  %v303_v6 = vld [vmem:[#allocation2 + $0x610] sm:$0xff] }
  0xd8   :  { %1365 = vmatprep.subr.mxu0 %v393_v20  ;;  %1470 = vmatprep.subr.mxu1 %v1697_v19  ;;  %v1007_v18 = vld [vmem:[#allocation6 + $0x80] sm:$0xff] }
  0xd9   :  { %1366 = vmatpush3.msra.mxu0 %v345_v21  ;;  %1471 = vmatpush3.msra.mxu1 %v402_v22  ;;  %v991_v20 = vld [vmem:[#allocation6] sm:$0xff]  ;;  %v1038_v21 = vld [vmem:[#allocation6 + $0x178] sm:$0xff]  ;;  %v1037_v22 = vld [vmem:[#allocation6 + $0x170] sm:$0xff] }
  0xda   :  { %1367 = vmatprep.subr.mxu0 %v390_v23  ;;  %1472 = vmatprep.subr.mxu1 %v1697_v19  ;;  %v1036_v23 = vld [vmem:[#allocation6 + $0x168] sm:$0xff] }
  0xdb   :  { %1368 = vmatpush3.msra.mxu0 %v342_v24  ;;  %1473 = vmatpush3.msra.mxu1 %v399_v3  ;;  %v1035_v24 = vld [vmem:[#allocation6 + $0x160] sm:$0xff]  ;;  %v1034_v3 = vld [vmem:[#allocation6 + $0x158] sm:$0xff] }
  0xdc   :  { %1369 = vmatprep.subr.mxu0 %v387_v60  ;;  %1474 = vmatprep.mubr.msk.f32.mxu1 %vm1698_vm1, %v1697_v19  ;;  %v1033_v60 = vld [vmem:[#allocation6 + $0x150] sm:$0xff] }
  0xdd   :  { %1370 = vmatpush3.msra.mxu0 %v339_v25  ;;  %1475 = vmatmul.mubr.msk.f32.vlgmr.msra.gmra.mxu1 %vm420_vm0, %v108_v16  ;;  %v1008_v16 = vld [vmem:[#allocation6 + $0x88] sm:$0xff] }
  0xde   :  { %1371 = vmatprep.subr.mxu0 %v384_v5  ;;  %1401 = vmatprep.subr.mxu1 %v1022_v26  ;;  %v1032_v25 = vld [vmem:[#allocation6 + $0x148] sm:$0xff]  ;;  %v1031_v5 = vld [vmem:[#allocation6 + $0x140] sm:$0xff]  ;;  %v1030_v26 = vld [vmem:[#allocation6 + $0x138] sm:$0xff] }
  0xdf   :  { %1372 = vmatpush3.msra.mxu0 %v336_v27  ;;  %1402 = vmatpush3.msra.mxu1 %v1006_v63  ;;  %v1029_v27 = vld [vmem:[#allocation6 + $0x130] sm:$0xff]  ;;  %v1028_v63 = vld [vmem:[#allocation6 + $0x128] sm:$0xff] }
  0xe0   :  { %1373 = vmatprep.subr.mxu0 %v381_v28  ;;  %1403 = vmatprep.subr.mxu1 %v1021_v29  ;;  %v1027_v28 = vld [vmem:[#allocation6 + $0x120] sm:$0xff]  ;;  %v1026_v29 = vld [vmem:[#allocation6 + $0x118] sm:$0xff] }
  0xe1   :  { %1374 = vmatpush3.msra.mxu0 %v333_v30  ;;  %1404 = vmatpush3.msra.mxu1 %v1005_v31  ;;  %v1025_v30 = vld [vmem:[#allocation6 + $0x110] sm:$0xff]  ;;  %v1024_v31 = vld [vmem:[#allocation6 + $0x108] sm:$0xff] }
  0xe2   :  { %1375 = vmatprep.subr.mxu0 %v378_v32  ;;  %1405 = vmatprep.subr.mxu1 %v1020_v33  ;;  %v1023_v32 = vld [vmem:[#allocation6 + $0x100] sm:$0xff]  ;;  %v405_v33 = vlaneseq }
  0xe3   :  { %1376 = vmatpush3.msra.mxu0 %v330_v34  ;;  %1406 = vmatpush3.msra.mxu1 %v1004_v35 }
  0xe4   :  { %1377 = vmatprep.subr.mxu0 %v375_v36  ;;  %1407 = vmatprep.subr.mxu1 %v1019_v37  ;;  %v406_v34 = vshrl.u32 %v405_v33, 7  ;;  %v403_v36 = vld [vmem:[#allocation4] sm:$0x7] }
  0xe5   :  { %1378 = vmatpush3.msra.mxu0 %v327_v38  ;;  %1408 = vmatpush3.msra.mxu1 %v1003_v39 }
  0xe6   :  { %1379 = vmatprep.subr.mxu0 %v372_v40  ;;  %1409 = vmatprep.subr.mxu1 %v1018_v41  ;;  %v407_v35 = vsub.s32 0, %v406_v34  ;;  %v411_v37 = vsub.s32 1, %v406_v34 }
  0xe7   :  { %1380 = vmatpush3.msra.mxu0 %v324_v42  ;;  %1410 = vmatpush3.msra.mxu1 %v1002_v43 }
  0xe8   :  { %1381 = vmatprep.subr.mxu0 %v369_v44  ;;  %1411 = vmatprep.subr.mxu1 %v1017_v45  ;;  %v408_v40 = vrot.slane %v403_v36, %v407_v35  ;;  %v412_v41 = vrot.slane %v403_v36, %v411_v37 }
  0xe9   :  { %1382 = vmatpush3.msra.mxu0 %v321_v46  ;;  %1412 = vmatpush3.msra.mxu1 %v1001_v47 }
  0xea   :  { %1383 = vmatprep.subr.mxu0 %v366_v48  ;;  %1413 = vmatprep.subr.mxu1 %v1016_v49 }
  0xeb   :  { %1384 = vmatpush3.msra.mxu0 %v318_v50  ;;  %1414 = vmatpush3.msra.mxu1 %v1000_v51 }
  0xec   :  { %1385 = vmatprep.subr.mxu0 %v363_v52  ;;  %1415 = vmatprep.subr.mxu1 %v1015_v53 }
  0xed   :  { %1386 = vmatpush3.msra.mxu0 %v315_v54  ;;  %1416 = vmatpush3.msra.mxu1 %v999_v55 }
  0xee   :  { %1387 = vmatprep.subr.mxu0 %v360_v56  ;;  %1417 = vmatprep.subr.mxu1 %v1014_v57 }
  0xef   :  { %1388 = vmatpush3.msra.mxu0 %v312_v58  ;;  %1418 = vmatpush3.msra.mxu1 %v998_v59 }
  0xf0   :  { %1389 = vmatprep.subr.mxu0 %v357_v61  ;;  %1419 = vmatprep.subr.mxu1 %v1013_v62 }
  0xf1   :  { %1390 = vmatpush3.msra.mxu0 %v309_v0  ;;  %1420 = vmatpush3.msra.mxu1 %v997_v7 }
  0xf2   :  { %1391 = vmatprep.subr.mxu0 %v354_v1  ;;  %1421 = vmatprep.subr.mxu1 %v1012_v9 }
  0xf3   :  { %1392 = vmatpush3.msra.mxu0 %v306_v2  ;;  %1422 = vmatpush3.msra.mxu1 %v996_v10  ;;  %v415_v2 = vsub.s32 2, %v406_v34 }
  0xf4   :  { %1393 = vmatprep.subr.mxu0 %v351_v4  ;;  %1423 = vmatprep.subr.mxu1 %v1011_v11 }
  0xf5   :  { %1394 = vmatpush3.msra.mxu0 %v303_v6  ;;  %1424 = vmatpush3.msra.mxu1 %v995_v12  ;;  %v416_v4 = vrot.slane %v403_v36, %v415_v2 }
  0xf6   :  { %913 = vmatmul.mubr.f32.vlgmr.msra.gmra.mxu0 %v1789_v8  ;;  %1477 = vmatprep.subr.mxu0 %v1697_v19  ;;  %v993_v8 = vld [vmem:[#allocation6 + $0x10] sm:$0xff] }
  0xf7   :  { %1509 = vmatprep.mubr.msk.f32.mxu0 %vm1698_vm1, %v1697_v19  ;;  %1425 = vmatprep.subr.mxu1 %v1010_v13 }
  0xf8   :  { %1426 = vmatpush3.msra.mxu1 %v994_v14  ;;  %1478 = vmatpush3.msra.mxu0 %v1038_v21  ;;  %v1198_v21 = vld [vmem:[#allocation9 + $0x58] sm:$0xff] }
  0xf9   :  { %1427 = vmatprep.subr.mxu1 %v1009_v15  ;;  %1479 = vmatprep.subr.mxu0 %v1697_v19 }
  0xfa   :  { %1428 = vmatpush3.msra.mxu1 %v993_v8  ;;  %1480 = vmatpush3.msra.mxu0 %v1037_v22  ;;  %v1197_v22 = vld [vmem:[#allocation9 + $0x50] sm:$0xff] }
  0xfb   :  { %1429 = vmatprep.subr.mxu1 %v1008_v16  ;;  %1481 = vmatprep.subr.mxu0 %v1697_v19  ;;  %v1202_v16 = vld [vmem:[#allocation9 + $0x78] sm:$0xff] }
  0xfc   :  { %1430 = vmatpush3.msra.mxu1 %v992_v17  ;;  %1482 = vmatpush3.msra.mxu0 %v1036_v23  ;;  %v1201_v17 = vld [vmem:[#allocation9 + $0x70] sm:$0xff]  ;;  %v1196_v23 = vld [vmem:[#allocation9 + $0x48] sm:$0xff] }
  0xfd   :  { %1431 = vmatprep.subr.mxu1 %v1007_v18  ;;  %1483 = vmatprep.subr.mxu0 %v1697_v19  ;;  %v1200_v18 = vld [vmem:[#allocation9 + $0x68] sm:$0xff] }
  0xfe   :  { %1432 = vmatpush3.msra.mxu1 %v991_v20  ;;  %1484 = vmatpush3.msra.mxu0 %v1035_v24  ;;  %v1199_v20 = vld [vmem:[#allocation9 + $0x60] sm:$0xff] }
  0xff   :  { %1512 = vmatprep.subr.mxu1 %v1697_v19  ;;  %1485 = vmatprep.subr.mxu0 %v1697_v19  ;;  %v1195_v24 = vld [vmem:[#allocation9 + $0x40] sm:$0xff] }
 0x100   :  { %1486 = vmatpush3.msra.mxu0 %v1034_v3  ;;  %v1194_v3 = vld [vmem:[#allocation9 + $0x38] sm:$0xff] }
 0x101   :  { %1487 = vmatprep.subr.mxu0 %v1697_v19 }
 0x102   :  { %1488 = vmatpush3.msra.mxu0 %v1033_v60  ;;  %v1193_v60 = vld [vmem:[#allocation9 + $0x30] sm:$0xff] }
 0x103   :  { %1489 = vmatprep.subr.mxu0 %v1697_v19 }
 0x104   :  { %1490 = vmatpush3.msra.mxu0 %v1032_v25  ;;  %v1192_v25 = vld [vmem:[#allocation9 + $0x28] sm:$0xff] }
 0x105   :  { %1491 = vmatprep.subr.mxu0 %v1697_v19 }
 0x106   :  { %1492 = vmatpush3.msra.mxu0 %v1031_v5  ;;  %v1191_v5 = vld [vmem:[#allocation9 + $0x20] sm:$0xff] }
 0x107   :  { %1493 = vmatprep.subr.mxu0 %v1697_v19 }
 0x108   :  { %1494 = vmatpush3.msra.mxu0 %v1030_v26  ;;  %v1190_v26 = vld [vmem:[#allocation9 + $0x18] sm:$0xff] }
 0x109   :  { %1495 = vmatprep.subr.mxu0 %v1697_v19 }
 0x10a   :  { %1496 = vmatpush3.msra.mxu0 %v1029_v27  ;;  %v1189_v27 = vld [vmem:[#allocation9 + $0x10] sm:$0xff] }
 0x10b   :  { %1497 = vmatprep.subr.mxu0 %v1697_v19 }
 0x10c   :  { %1498 = vmatpush3.msra.mxu0 %v1028_v63  ;;  %v1188_v63 = vld [vmem:[#allocation9 + $0x8] sm:$0xff] }
 0x10d   :  { %1499 = vmatprep.subr.mxu0 %v1697_v19 }
 0x10e   :  { %1500 = vmatpush3.msra.mxu0 %v1027_v28  ;;  %v1187_v28 = vld [vmem:[#allocation9] sm:$0xff] }
 0x10f   :  { %1501 = vmatprep.subr.mxu0 %v1697_v19 }
 0x110   :  { %1502 = vmatpush3.msra.mxu0 %v1026_v29 }
 0x111   :  { %1503 = vmatprep.subr.mxu0 %v1697_v19 }
 0x112   :  { %1504 = vmatpush3.msra.mxu0 %v1025_v30 }
 0x113   :  { %1505 = vmatprep.subr.mxu0 %v1697_v19 }
 0x114   :  { %1506 = vmatpush3.msra.mxu0 %v1024_v31 }
 0x115   :  { %1507 = vmatprep.subr.mxu0 %v1697_v19 }
 0x116   :  { %1508 = vmatpush3.msra.mxu0 %v1023_v32  ;;  %v1291_v32 = vld [vmem:[#allocation7] ss:$0 sm:$0xff] }
 0x14e   :  { %v490_v39 = vpop.f32.mrf.mxu0 }
 0x14f   :  { %v491_v45 = vadd.f32 %v490_v39, %v408_v40 }
 0x150   :  { %v492_v43 = vpop.f32.mrf.mxu0 }
 0x151   :  { %v561_v38 = vpop.f32.mrf.mxu1  ;;  %v493_v47 = vadd.f32 %v492_v43, %v412_v41 }
 0x152   :  { %v562_v50 = vadd.f32 %v561_v38, %v491_v45  ;;  %v1292_v38 = vld [vmem:[#allocation10] ss:$0 sm:$0xff] }
 0x153   :  { %v563_v42 = vpop.f32.mrf.mxu1 }
 0x154   :  { %v564_v51 = vadd.f32 %v563_v42, %v493_v47 }
 0x174   :  { %v1325_v44 = vpop.f32.mrf.mxu1 }
 0x176   :  { %v1326_v49 = vpop.f32.mrf.mxu1 }
 0x177   :  { %v1327_v6 = vadd.f32 %v1326_v49, %v1325_v44 }
 0x179   :  { %v775_v7 = vadd.f32 %v1327_v6, %v416_v4 }
 0x190   :  { %v632_v46 = vpop.f32.mrf.mxu0 }
 0x191   :  { %v633_v52 = vadd.f32 %v632_v46, %v562_v50 }
 0x192   :  { %v634_v48 = vpop.f32.mrf.mxu0 }
 0x193   :  { %v635_v54 = vadd.f32 %v634_v48, %v564_v51 }
 0x195   :  { %v1360_v55 = vpop.f32.mrf.mxu1 }
 0x196   :  { %v703_v53 = vpop.f32.mrf.mxu0 }
 0x197   :  { %v704_v56 = vadd.f32 %v703_v53, %v633_v52  ;;  %v1361_v59 = vpop.f32.mrf.mxu1 }
 0x198   :  { %v705_v57 = vpop.f32.mrf.mxu0  ;;  %v1362_v9 = vadd.f32 %v1361_v59, %v1360_v55 }
 0x199   :  { %v706_v58 = vadd.f32 %v705_v57, %v635_v54  ;;  %v988_v62 = vmul.f32 %v704_v56, %v704_v56 }
 0x19a   :  { %v845_v12 = vadd.f32 %v1362_v9, %v775_v7 }
 0x19b   :  { %v989_v61 = vmul.f32 %v706_v58, %v706_v58 }
 0x19d   :  { %1110 = vmatprep.mubr.f32.mxu1 %v989_v61  ;;  %v984_v0 = vpop.f32.mrf.mxu1 }
 0x19e   :  { %1111 = vmatmul.mubr.f32.vlgmr.msra.gmra.mxu1 %v988_v62 }
 0x19f   :  { %v1476_v1 = vpop.f32.mrf.mxu1  ;;  %1544 = vmatprep.mubr.msk.f32.mxu1 %vm1698_vm1, %v1697_v19  ;;  %1513 = vmatpush3.msra.mxu1 %v1202_v16 }
 0x1a0   :  { %1514 = vmatprep.subr.mxu1 %v1697_v19 }
 0x1a1   :  { %1515 = vmatpush3.msra.mxu1 %v1201_v17 }
 0x1a2   :  { %1516 = vmatprep.subr.mxu1 %v1697_v19 }
 0x1a3   :  { %1517 = vmatpush3.msra.mxu1 %v1200_v18 }
 0x1a4   :  { %1518 = vmatprep.subr.mxu1 %v1697_v19 }
 0x1a5   :  { %1519 = vmatpush3.msra.mxu1 %v1199_v20 }
 0x1a6   :  { %1520 = vmatprep.subr.mxu1 %v1697_v19 }
 0x1a7   :  { %1521 = vmatpush3.msra.mxu1 %v1198_v21 }
 0x1a8   :  { %1522 = vmatprep.subr.mxu1 %v1697_v19 }
 0x1a9   :  { %1523 = vmatpush3.msra.mxu1 %v1197_v22 }
 0x1aa   :  { %1524 = vmatprep.subr.mxu1 %v1697_v19 }
 0x1ab   :  { %1525 = vmatpush3.msra.mxu1 %v1196_v23 }
 0x1ac   :  { %1526 = vmatprep.subr.mxu1 %v1697_v19 }
 0x1ad   :  { %1527 = vmatpush3.msra.mxu1 %v1195_v24 }
 0x1ae   :  { %1528 = vmatprep.subr.mxu1 %v1697_v19 }
 0x1af   :  { %1529 = vmatpush3.msra.mxu1 %v1194_v3 }
 0x1b0   :  { %1530 = vmatprep.subr.mxu1 %v1697_v19 }
 0x1b1   :  { %1531 = vmatpush3.msra.mxu1 %v1193_v60 }
 0x1b2   :  { %1532 = vmatprep.subr.mxu1 %v1697_v19 }
 0x1b3   :  { %1533 = vmatpush3.msra.mxu1 %v1192_v25 }
 0x1b4   :  { %1534 = vmatprep.subr.mxu1 %v1697_v19 }
 0x1b5   :  { %1535 = vmatpush3.msra.mxu1 %v1191_v5 }
 0x1b6   :  { %v1395_v10 = vpop.f32.mrf.mxu0  ;;  %1536 = vmatprep.subr.mxu1 %v1697_v19 }
 0x1b7   :  { %1537 = vmatpush3.msra.mxu1 %v1190_v26 }
 0x1b8   :  { %v1396_v11 = vpop.f32.mrf.mxu0  ;;  %1538 = vmatprep.subr.mxu1 %v1697_v19 }
 0x1b9   :  { %v1397_v13 = vadd.f32 %v1396_v11, %v1395_v10  ;;  %1539 = vmatpush3.msra.mxu1 %v1189_v27 }
 0x1ba   :  { %1540 = vmatprep.subr.mxu1 %v1697_v19 }
 0x1bb   :  { %v915_v14 = vadd.f32 %v1397_v13, %v845_v12  ;;  %1541 = vmatpush3.msra.mxu1 %v1188_v63 }
 0x1bc   :  { %1542 = vmatprep.subr.mxu1 %v1697_v19 }
 0x1bd   :  { %v985_v15 = vadd.f32 %v984_v0, %v915_v14  ;;  %1543 = vmatpush3.msra.mxu1 %v1187_v28 }
 0x1bf   :  { %v990_v8 = vmul.f32 %v985_v15, %v985_v15 }
 0x1c1   :  { %1510 = vmatmul.mubr.f32.vlgmr.msra.gmra.mxu0 %v990_v8 }
 0x25e   :  { %v1433_v29 = vpop.f32.mrf.mxu1 }
 0x260   :  { %v1434_v30 = vpop.f32.mrf.mxu1 }
 0x261   :  { %v1435_v31 = vadd.f32 %v1434_v30, %v1433_v29 }
 0x263   :  { %v1113_v33 = vadd.f32 %v1435_v31, %v1291_v32 }
 0x281   :  { %v1182_v34 = vpop.f32.mrf.mxu0 }
 0x282   :  { %v1183_v35 = vadd.f32 %v1182_v34, %v1113_v33 }
 0x283   :  { %v1511_v36 = vpop.f32.mrf.mxu0 }
 0x284   :  { %v1186_v37 = vmul.f32 %v1183_v35, %v1183_v35 }
 0x286   :  { %1545 = vmatmul.mubr.f32.vlgmr.msra.gmra.mxu1 %v1186_v37 }
 0x346   :  { %v1276_v39 = vpop.f32.mrf.mxu1 }
 0x347   :  { %v1277_v40 = vadd.f32 %v1292_v38, %v1276_v39 }
 0x348   :  { %v1546_v41 = vpop.f32.mrf.mxu1 }
 0x349   :  { %1280 = vst [vmem:[%s1851_s7] sm:$0xff] %v1277_v40 }
 0x34a   :  { %1285 = vsyncpa [#allocation3], 1 }
 0x34b   :  { %1286 = vsyncpa [#allocation5], 1 }
 0x34c   :  { %1287 = vsyncpa [#allocation8], 1 }
 0x34d   :  { %1288 = vsyncpa [#allocation11], 1 }

</bundles_post_ra>
